<compile_context>
chip_gen: v7x
topology: tpu7x:2x2x1
jax: 0.10.0
libtpu: 0.0.40
codegen_flags: <defaults>
</compile_context>

<pallas_src>
import functools

import numpy as np
import jax
import jax.numpy as jnp
from jax.experimental import pallas as pl
from jax.experimental.pallas import tpu as pltpu


def _round_up(x, m):
    return ((x + m - 1) // m) * m


# ---------------- Pallas kernels ----------------

def conv_matmul_kernel(w_ref, b_ref, p_ref, o_ref, *, negative_slope):
    """Fused conv-as-matmul: (C_out, K) @ (K, tile_m) + bias (+ LeakyReLU).

    Output tile (C_out, tile_m) is lane-dense along the row (M) axis."""
    acc = jnp.dot(w_ref[...], p_ref[...], preferred_element_type=jnp.float32)
    acc = acc + b_ref[...]                     # (C_out, 1) broadcast over lanes
    if negative_slope is not None:
        acc = jnp.where(acc >= 0, acc, negative_slope * acc)
    o_ref[...] = acc.astype(o_ref.dtype)


def batch_std_kernel(x_ref, o_ref):
    """Unbiased (ddof=1) std over the batch axis of a (C, B, tile_d) block,
    matching torch.Tensor.std(dim=0).  NOTE: like PyTorch, B == 1 yields
    0/0 = NaN (unbiased estimator undefined for a single sample)."""
    x = x_ref[...].astype(jnp.float32)
    n = x.shape[1]
    mean = jnp.mean(x, axis=1, keepdims=True)
    var = jnp.sum((x - mean) ** 2, axis=1, keepdims=True) * (1.0 / (n - 1))
    o_ref[...] = jnp.sqrt(var).astype(o_ref.dtype)


# ---------------- wrapper ops ----------------

def _im2col_cmajor(x, kh, kw, stride, pad):
    """Channel-major im2col: (C, B, H, W) -> (C*kh*kw, B*Ho*Wo).

    K ordering is (c, kh, kw) (matches torch weight.reshape(C_out, -1)); M
    ordering is (b, ho, wo).  No transposes: only strided slices and a
    contiguous reshape, all fusable into the pallas input DMA."""
    if pad:
        x = jnp.pad(x, ((0, 0), (0, 0), (pad, pad), (pad, pad)))
    C, B, H, W = x.shape
    Ho = (H - kh) // stride + 1
    Wo = (W - kw) // stride + 1
    cols = [x[:, :, i:i + stride * Ho:stride, j:j + stride * Wo:stride]
            for i in range(kh) for j in range(kw)]
    p = jnp.stack(cols, axis=1)                     # (C, kh*kw, B, Ho, Wo)
    return p.reshape(C * kh * kw, B * Ho * Wo), Ho, Wo


def _pick_tile_m(M, max_tile=512):
    """Row tile: multiple of 128 (lane-dense stores), <= max_tile, shrunk so
    the grid has >= 2 steps when M is large enough (v7x megacore)."""
    tile = min(max_tile, _round_up(M, 128))
    while tile > 128 and pl.cdiv(M, tile) < 2:
        tile -= 128
    return tile


def fused_conv_matmul(patches, wm, b, *, negative_slope=None,
                      out_dtype=jnp.bfloat16, max_tile_m=512):
    """One conv layer as a single Pallas kernel on lane-dense 2-D slabs."""
    C_out, K = wm.shape
    Kp, M = patches.shape
    assert Kp == K

    K_pad = _round_up(K, 128)          # aligned weight loads / MXU stripes
    tile_m = _pick_tile_m(M, max_tile_m)
    M_pad = _round_up(M, tile_m)

    # bf16 MXU operands; zero padding is numerically exact.
    patches = jnp.pad(patches.astype(jnp.bfloat16),
                      ((0, K_pad - K), (0, M_pad - M)))
    wm = jnp.pad(wm.astype(jnp.bfloat16), ((0, 0), (0, K_pad - K)))
    bm = b.reshape(C_out, 1).astype(jnp.float32)

    out = pl.pallas_call(
        functools.partial(conv_matmul_kernel, negative_slope=negative_slope),
        out_shape=jax.ShapeDtypeStruct((C_out, M_pad), out_dtype),
        grid=(M_pad // tile_m,),
        in_specs=[
            # weight / bias are grid-invariant (block (0,0) every step), so
            # the pipeline DMAs them only once per kernel invocation.
            pl.BlockSpec((C_out, K_pad), lambda i: (0, 0)),
            pl.BlockSpec((C_out, 1), lambda i: (0, 0)),
            pl.BlockSpec((K_pad, tile_m), lambda i: (0, i)),
        ],
        out_specs=pl.BlockSpec((C_out, tile_m), lambda i: (0, i)),
        compiler_params=pltpu.CompilerParams(
            dimension_semantics=("parallel",),
            # let XLA fuse the im2col/pad/concat producer into the patches
            # operand instead of materializing the slab in HBM first.
            allow_input_fusion=[False, False, True],
        ),
    )(wm, bm, patches)

    return out[:, :M]


def conv2d_cmajor(x, w, b, *, stride, padding, negative_slope=None,
                  out_dtype=jnp.bfloat16):
    """Conv2d (+ fused LeakyReLU) on a channel-major (C_in, B, H, W) input."""
    C_out = w.shape[0]
    B = x.shape[1]
    patches, Ho, Wo = _im2col_cmajor(x, w.shape[2], w.shape[3], stride, padding)
    out = fused_conv_matmul(patches, w.reshape(C_out, -1), b,
                            negative_slope=negative_slope, out_dtype=out_dtype)
    return out.reshape(C_out, B, Ho, Wo)


def minibatch_std_cmajor(x):
    """std over the batch of a channel-major activation: (C,B,H,W)->(C,1,H,W)."""
    C, B, H, W = x.shape
    D = H * W
    # Tile the lane axis when it is 128-aligned so large activations never
    # exceed the scoped VMEM limit; tiny/ragged D fits in one full block.
    if D % 128 == 0:
        tile_d = min(1024, D)
        while D % tile_d:
            tile_d -= 128
    else:
        tile_d = D
    std = pl.pallas_call(
        batch_std_kernel,
        out_shape=jax.ShapeDtypeStruct((C, 1, D), jnp.bfloat16),
        grid=(D // tile_d,),
        in_specs=[pl.BlockSpec((C, B, tile_d), lambda i: (0, 0, i))],
        out_specs=pl.BlockSpec((C, 1, tile_d), lambda i: (0, 0, i)),
        compiler_params=pltpu.CompilerParams(
            dimension_semantics=("parallel",)),
    )(x.reshape(C, B, D))
    return std.reshape(C, 1, H, W)


def output_head(x, std_map, w1, b1, w2, b2):
    """output_layer applied to cat([x, std], dim=1) without materializing the
    batch broadcast or the concatenated activation in HBM: the std map's 3x3
    patches are appended to x's patches, matching torch's channel concat."""
    C, B, H, W = x.shape
    px, Ho, Wo = _im2col_cmajor(x, 3, 3, 1, 1)            # (C*9, B*Ho*Wo)
    ps, _, _ = _im2col_cmajor(std_map, 3, 3, 1, 1)        # (C*9, 1*Ho*Wo)
    ps = jnp.broadcast_to(ps.reshape(C * 9, 1, Ho * Wo),
                          (C * 9, B, Ho * Wo)).reshape(C * 9, B * Ho * Wo)
    patches = jnp.concatenate([px.astype(jnp.bfloat16),
                               ps.astype(jnp.bfloat16)], axis=0)

    h = fused_conv_matmul(patches, w1.reshape(w1.shape[0], -1), b1,
                          negative_slope=0.1)
    h = h.reshape(w1.shape[0], B, Ho, Wo)

    p2, Ho2, Wo2 = _im2col_cmajor(h, 3, 3, 1, 1)
    # TODO(synk): out1+out2 could share one kernel (keep the 64-ch tile +
    # halo in VMEM scratch) to drop the widest activation's HBM round trip.
    o = fused_conv_matmul(p2, w2.reshape(w2.shape[0], -1), b2,
                          negative_slope=None, out_dtype=jnp.float32)
    return o.reshape(w2.shape[0], B, Ho2, Wo2)


def projected_subdiscriminator(x_nchw, params):
    """Forward pass of ProjectedSubdiscriminator (NCHW in, NCHW out)."""
    # One-time layout change to channel-major; every intermediate activation
    # stays (C, B, H, W), so no per-layer transposes are needed.
    x = jnp.transpose(x_nchw, (1, 0, 2, 3)).astype(jnp.bfloat16)
    for w, b in params["down"]:
        x = conv2d_cmajor(x, w, b, stride=2, padding=0, negative_slope=0.1)
    std_map = minibatch_std_cmajor(x)                      # (C, 1, H, W)
    w1, b1 = params["out1"]
    w2, b2 = params["out2"]
    out = output_head(x, std_map, w1, b1, w2, b2)          # (1, B, Ho, Wo) f32
    return jnp.transpose(out, (1, 0, 2, 3))                # back to NCHW


# ---------------- pure-JAX reference (for verification) ----------------

def _conv2d_ref(x, w, b, stride, padding):
    out = jax.lax.conv_general_dilated(
        x, w, window_strides=(stride, stride),
        padding=[(padding, padding), (padding, padding)],
        dimension_numbers=("NCHW", "OIHW", "NCHW"))
    return out + b[None, :, None, None]


def reference(x, params):
    lrelu = lambda v: jnp.where(v >= 0, v, 0.1 * v)
    for w, b in params["down"]:
        x = lrelu(_conv2d_ref(x, w, b, 2, 0))
    std = jnp.std(x, axis=0, ddof=1, keepdims=True)
    x = jnp.concatenate([x, jnp.broadcast_to(std, x.shape)], axis=1)
    w, b = params["out1"]
    x = lrelu(_conv2d_ref(x, w, b, 1, 1))
    w, b = params["out2"]
    return _conv2d_ref(x, w, b, 1, 1)


if __name__ == "__main__":
    # Small, deterministic config: batch=2, 4 input channels, 16x16 spatial,
    # internal_channels=16, num_downsamples=2 (spatial 16 -> 7 -> 2).
    B, C_in = 2, 4
    H = W = 16
    internal_channels = 16
    num_downsamples = 2

    key = jax.random.PRNGKey(0)
    keys = jax.random.split(key, 2 * num_downsamples + 5)

    params = {"down": []}
    c_prev = C_in
    ki = 0
    for _ in range(num_downsamples):
        w = 0.1 * jax.random.normal(
            keys[ki], (internal_channels, c_prev, 4, 4), jnp.float32); ki += 1
        b = 0.1 * jax.random.normal(
            keys[ki], (internal_channels,), jnp.float32); ki += 1
        params["down"].append((w, b))
        c_prev = internal_channels

    w1 = 0.1 * jax.random.normal(
        keys[ki], (64, 2 * internal_channels, 3, 3), jnp.float32); ki += 1
    b1 = 0.1 * jax.random.normal(keys[ki], (64,), jnp.float32); ki += 1
    w2 = 0.1 * jax.random.normal(keys[ki], (1, 64, 3, 3), jnp.float32); ki += 1
    b2 = 0.1 * jax.random.normal(keys[ki], (1,), jnp.float32); ki += 1
    params["out1"] = (w1, b1)
    params["out2"] = (w2, b2)

    x = jax.random.normal(keys[ki], (B, C_in, H, W), jnp.float32)

    fwd = jax.jit(projected_subdiscriminator)
    out = jax.block_until_ready(fwd(x, params))
    ref = jax.block_until_ready(reference(x, params))

    assert out.shape == ref.shape == (B, 1, 2, 2), (out.shape, ref.shape)
    # Tolerances sized for bf16 MXU operands chained through 4 conv layers
    # (accumulation/epilogue are f32).
    assert np.allclose(np.asarray(out, dtype=np.float32), np.asarray(ref),
                       rtol=5e-2, atol=8e-2), "mismatch vs reference"
    print("KERNEL_OK")
</pallas_src>

<mosaic_0001>
module attributes {stable_mosaic.version = 11 : i64} {
  func.func @conv_matmul_kernel(%arg0: i32, %arg1: memref<16x128xbf16, #tpu.memory_space<vmem>>, %arg2: memref<16x1xf32, #tpu.memory_space<vmem>>, %arg3: memref<128x128xbf16, #tpu.memory_space<vmem>>, %arg4: memref<16x128xbf16, #tpu.memory_space<vmem>>) attributes {dimension_semantics = [#tpu.dimension_semantics<parallel>], iteration_bounds = array<i64: 1>, scalar_prefetch = 0 : i64, scratch_operands = 0 : i64, tpu.core_type = #tpu.core_type<tc>, window_params = [{pipeline_mode = #tpu.pipeline_mode<synchronous>, transform_indices = @transform_0, window_bounds = array<i64: 16, 128>}, {pipeline_mode = #tpu.pipeline_mode<synchronous>, transform_indices = @transform_1, window_bounds = array<i64: 16, 1>}, {transform_indices = @transform_2, window_bounds = array<i64: 128, 128>}, {transform_indices = @transform_3, window_bounds = array<i64: 16, 128>}]} {
    %c0 = arith.constant 0 : index
    %c0_0 = arith.constant 0 : index
    %0 = vector.load %arg1[%c0, %c0_0] : memref<16x128xbf16, #tpu.memory_space<vmem>>, vector<16x128xbf16>
    %c0_1 = arith.constant 0 : index
    %c0_2 = arith.constant 0 : index
    %1 = vector.load %arg3[%c0_1, %c0_2] : memref<128x128xbf16, #tpu.memory_space<vmem>>, vector<128x128xbf16>
    %cst = arith.constant dense<0.000000e+00> : vector<16x128xf32>
    %2 = tpu.matmul %0, %1, %cst {dimension_numbers = #tpu.dot_dimension_numbers<[1], [0], [0], [1], [0, 0, 1, 1], [], []>} : vector<16x128xbf16>, vector<128x128xbf16>, vector<16x128xf32> -> vector<16x128xf32>
    %c0_3 = arith.constant 0 : index
    %c0_4 = arith.constant 0 : index
    %3 = vector.load %arg2[%c0_3, %c0_4] : memref<16x1xf32, #tpu.memory_space<vmem>>, vector<16x1xf32>
    %4 = vector.broadcast %3 : vector<16x1xf32> to vector<16x128xf32>
    %5 = arith.addf %2, %4 : vector<16x128xf32>
    %cst_5 = arith.constant 0.000000e+00 : f32
    %6 = vector.broadcast %cst_5 : f32 to vector<16x128xf32>
    %7 = arith.cmpf oge, %5, %6 : vector<16x128xf32>
    %cst_6 = arith.constant 1.000000e-01 : f32
    %8 = vector.broadcast %cst_6 : f32 to vector<16x128xf32>
    %9 = arith.mulf %8, %5 : vector<16x128xf32>
    %10 = arith.select %7, %5, %9 : vector<16x128xi1>, vector<16x128xf32>
    %11 = arith.truncf %10 : vector<16x128xf32> to vector<16x128xbf16>
    %c0_7 = arith.constant 0 : index
    %c0_8 = arith.constant 0 : index
    %12 = vector.load %arg4[%c0_7, %c0_8] : memref<16x128xbf16, #tpu.memory_space<vmem>>, vector<16x128xbf16>
    tpu.vector_store %arg4[%c0_7, %c0_8], %11 {strides = array<i32>} : memref<16x128xbf16, #tpu.memory_space<vmem>>, vector<16x128xbf16>,
    return
  }
  func.func @transform_0(%arg0: i32) -> (i32, i32) {
    %c0_i32 = arith.constant 0 : i32
    %c0_i32_0 = arith.constant 0 : i32
    %c0_i32_1 = arith.constant 0 : i32
    return %c0_i32, %c0_i32_0 : i32, i32
  }
  func.func @transform_1(%arg0: i32) -> (i32, i32) {
    %c0_i32 = arith.constant 0 : i32
    %c0_i32_0 = arith.constant 0 : i32
    %c0_i32_1 = arith.constant 0 : i32
    return %c0_i32, %c0_i32_0 : i32, i32
  }
  func.func @transform_2(%arg0: i32) -> (i32, i32) {
    %c0_i32 = arith.constant 0 : i32
    %c0_i32_0 = arith.constant 0 : i32
    return %c0_i32, %arg0 : i32, i32
  }
  func.func @transform_3(%arg0: i32) -> (i32, i32) {
    %c0_i32 = arith.constant 0 : i32
    %c0_i32_0 = arith.constant 0 : i32
    return %c0_i32, %arg0 : i32, i32
  }
}

module attributes {stable_mosaic.version = 11 : i64} {
  func.func @conv_matmul_kernel(%arg0: i32, %arg1: memref<16x256xbf16, #tpu.memory_space<vmem>>, %arg2: memref<16x1xf32, #tpu.memory_space<vmem>>, %arg3: memref<256x128xbf16, #tpu.memory_space<vmem>>, %arg4: memref<16x128xbf16, #tpu.memory_space<vmem>>) attributes {dimension_semantics = [#tpu.dimension_semantics<parallel>], iteration_bounds = array<i64: 1>, scalar_prefetch = 0 : i64, scratch_operands = 0 : i64, tpu.core_type = #tpu.core_type<tc>, window_params = [{pipeline_mode = #tpu.pipeline_mode<synchronous>, transform_indices = @transform_0, window_bounds = array<i64: 16, 256>}, {pipeline_mode = #tpu.pipeline_mode<synchronous>, transform_indices = @transform_1, window_bounds = array<i64: 16, 1>}, {transform_indices = @transform_2, window_bounds = array<i64: 256, 128>}, {transform_indices = @transform_3, window_bounds = array<i64: 16, 128>}]} {
    %c0 = arith.constant 0 : index
    %c0_0 = arith.constant 0 : index
    %0 = vector.load %arg1[%c0, %c0_0] : memref<16x256xbf16, #tpu.memory_space<vmem>>, vector<16x256xbf16>
    %c0_1 = arith.constant 0 : index
    %c0_2 = arith.constant 0 : index
    %1 = vector.load %arg3[%c0_1, %c0_2] : memref<256x128xbf16, #tpu.memory_space<vmem>>, vector<256x128xbf16>
    %cst = arith.constant dense<0.000000e+00> : vector<16x128xf32>
    %2 = tpu.matmul %0, %1, %cst {dimension_numbers = #tpu.dot_dimension_numbers<[1], [0], [0], [1], [0, 0, 1, 1], [], []>} : vector<16x256xbf16>, vector<256x128xbf16>, vector<16x128xf32> -> vector<16x128xf32>
    %c0_3 = arith.constant 0 : index
    %c0_4 = arith.constant 0 : index
    %3 = vector.load %arg2[%c0_3, %c0_4] : memref<16x1xf32, #tpu.memory_space<vmem>>, vector<16x1xf32>
    %4 = vector.broadcast %3 : vector<16x1xf32> to vector<16x128xf32>
    %5 = arith.addf %2, %4 : vector<16x128xf32>
    %cst_5 = arith.constant 0.000000e+00 : f32
    %6 = vector.broadcast %cst_5 : f32 to vector<16x128xf32>
    %7 = arith.cmpf oge, %5, %6 : vector<16x128xf32>
    %cst_6 = arith.constant 1.000000e-01 : f32
    %8 = vector.broadcast %cst_6 : f32 to vector<16x128xf32>
    %9 = arith.mulf %8, %5 : vector<16x128xf32>
    %10 = arith.select %7, %5, %9 : vector<16x128xi1>, vector<16x128xf32>
    %11 = arith.truncf %10 : vector<16x128xf32> to vector<16x128xbf16>
    %c0_7 = arith.constant 0 : index
    %c0_8 = arith.constant 0 : index
    %12 = vector.load %arg4[%c0_7, %c0_8] : memref<16x128xbf16, #tpu.memory_space<vmem>>, vector<16x128xbf16>
    tpu.vector_store %arg4[%c0_7, %c0_8], %11 {strides = array<i32>} : memref<16x128xbf16, #tpu.memory_space<vmem>>, vector<16x128xbf16>,
    return
  }
  func.func @transform_0(%arg0: i32) -> (i32, i32) {
    %c0_i32 = arith.constant 0 : i32
    %c0_i32_0 = arith.constant 0 : i32
    %c0_i32_1 = arith.constant 0 : i32
    return %c0_i32, %c0_i32_0 : i32, i32
  }
  func.func @transform_1(%arg0: i32) -> (i32, i32) {
    %c0_i32 = arith.constant 0 : i32
    %c0_i32_0 = arith.constant 0 : i32
    %c0_i32_1 = arith.constant 0 : i32
    return %c0_i32, %c0_i32_0 : i32, i32
  }
  func.func @transform_2(%arg0: i32) -> (i32, i32) {
    %c0_i32 = arith.constant 0 : i32
    %c0_i32_0 = arith.constant 0 : i32
    return %c0_i32, %arg0 : i32, i32
  }
  func.func @transform_3(%arg0: i32) -> (i32, i32) {
    %c0_i32 = arith.constant 0 : i32
    %c0_i32_0 = arith.constant 0 : i32
    return %c0_i32, %arg0 : i32, i32
  }
}

module attributes {stable_mosaic.version = 11 : i64} {
  func.func @batch_std_kernel(%arg0: i32, %arg1: memref<16x2x4xbf16, #tpu.memory_space<vmem>>, %arg2: memref<16x1x4xbf16, #tpu.memory_space<vmem>>) attributes {dimension_semantics = [#tpu.dimension_semantics<parallel>], iteration_bounds = array<i64: 1>, scalar_prefetch = 0 : i64, scratch_operands = 0 : i64, tpu.core_type = #tpu.core_type<tc>, window_params = [{transform_indices = @transform_0, window_bounds = array<i64: 16, 2, 4>}, {transform_indices = @transform_1, window_bounds = array<i64: 16, 1, 4>}]} {
    %c0 = arith.constant 0 : index
    %c0_0 = arith.constant 0 : index
    %c0_1 = arith.constant 0 : index
    %0 = vector.load %arg1[%c0, %c0_0, %c0_1] : memref<16x2x4xbf16, #tpu.memory_space<vmem>>, vector<16x2x4xbf16>
    %1 = arith.extf %0 : vector<16x2x4xbf16> to vector<16x2x4xf32>
    %cst = arith.constant dense<0.000000e+00> : vector<16x4xf32>
    %2 = vector.multi_reduction <add>, %1, %cst [1] : vector<16x2x4xf32> to vector<16x4xf32>
    %3 = vector.shape_cast %2 : vector<16x4xf32> to vector<16x1x4xf32>
    %cst_2 = arith.constant 2.000000e+00 : f32
    %4 = vector.broadcast %cst_2 : f32 to vector<16x1x4xf32>
    %5 = arith.divf %3, %4 : vector<16x1x4xf32>
    %6 = vector.broadcast %5 : vector<16x1x4xf32> to vector<16x2x4xf32>
    %7 = arith.subf %1, %6 : vector<16x2x4xf32>
    %8 = arith.mulf %7, %7 : vector<16x2x4xf32>
    %cst_3 = arith.constant dense<0.000000e+00> : vector<16x4xf32>
    %9 = vector.multi_reduction <add>, %8, %cst_3 [1] : vector<16x2x4xf32> to vector<16x4xf32>
    %10 = vector.shape_cast %9 : vector<16x4xf32> to vector<16x1x4xf32>
    %cst_4 = arith.constant 1.000000e+00 : f32
    %11 = vector.broadcast %cst_4 : f32 to vector<16x1x4xf32>
    %12 = arith.mulf %10, %11 : vector<16x1x4xf32>
    %13 = math.sqrt %12 : vector<16x1x4xf32>
    %14 = arith.truncf %13 : vector<16x1x4xf32> to vector<16x1x4xbf16>
    %c0_5 = arith.constant 0 : index
    %c0_6 = arith.constant 0 : index
    %c0_7 = arith.constant 0 : index
    %15 = vector.load %arg2[%c0_5, %c0_6, %c0_7] : memref<16x1x4xbf16, #tpu.memory_space<vmem>>, vector<16x1x4xbf16>
    tpu.vector_store %arg2[%c0_5, %c0_6, %c0_7], %14 {strides = array<i32>} : memref<16x1x4xbf16, #tpu.memory_space<vmem>>, vector<16x1x4xbf16>,
    return
  }
  func.func @transform_0(%arg0: i32) -> (i32, i32, i32) {
    %c0_i32 = arith.constant 0 : i32
    %c0_i32_0 = arith.constant 0 : i32
    %c0_i32_1 = arith.constant 0 : i32
    return %c0_i32, %c0_i32_0, %arg0 : i32, i32, i32
  }
  func.func @transform_1(%arg0: i32) -> (i32, i32, i32) {
    %c0_i32 = arith.constant 0 : i32
    %c0_i32_0 = arith.constant 0 : i32
    %c0_i32_1 = arith.constant 0 : i32
    return %c0_i32, %c0_i32_0, %arg0 : i32, i32, i32
  }
}

module attributes {stable_mosaic.version = 11 : i64} {
  func.func @conv_matmul_kernel(%arg0: i32, %arg1: memref<64x384xbf16, #tpu.memory_space<vmem>>, %arg2: memref<64x1xf32, #tpu.memory_space<vmem>>, %arg3: memref<384x128xbf16, #tpu.memory_space<vmem>>, %arg4: memref<64x128xbf16, #tpu.memory_space<vmem>>) attributes {dimension_semantics = [#tpu.dimension_semantics<parallel>], iteration_bounds = array<i64: 1>, scalar_prefetch = 0 : i64, scratch_operands = 0 : i64, tpu.core_type = #tpu.core_type<tc>, window_params = [{pipeline_mode = #tpu.pipeline_mode<synchronous>, transform_indices = @transform_0, window_bounds = array<i64: 64, 384>}, {pipeline_mode = #tpu.pipeline_mode<synchronous>, transform_indices = @transform_1, window_bounds = array<i64: 64, 1>}, {transform_indices = @transform_2, window_bounds = array<i64: 384, 128>}, {transform_indices = @transform_3, window_bounds = array<i64: 64, 128>}]} {
    %c0 = arith.constant 0 : index
    %c0_0 = arith.constant 0 : index
    %0 = vector.load %arg1[%c0, %c0_0] : memref<64x384xbf16, #tpu.memory_space<vmem>>, vector<64x384xbf16>
    %c0_1 = arith.constant 0 : index
    %c0_2 = arith.constant 0 : index
    %1 = vector.load %arg3[%c0_1, %c0_2] : memref<384x128xbf16, #tpu.memory_space<vmem>>, vector<384x128xbf16>
    %cst = arith.constant dense<0.000000e+00> : vector<64x128xf32>
    %2 = tpu.matmul %0, %1, %cst {dimension_numbers = #tpu.dot_dimension_numbers<[1], [0], [0], [1], [0, 0, 1, 1], [], []>} : vector<64x384xbf16>, vector<384x128xbf16>, vector<64x128xf32> -> vector<64x128xf32>
    %c0_3 = arith.constant 0 : index
    %c0_4 = arith.constant 0 : index
    %3 = vector.load %arg2[%c0_3, %c0_4] : memref<64x1xf32, #tpu.memory_space<vmem>>, vector<64x1xf32>
    %4 = vector.broadcast %3 : vector<64x1xf32> to vector<64x128xf32>
    %5 = arith.addf %2, %4 : vector<64x128xf32>
    %cst_5 = arith.constant 0.000000e+00 : f32
    %6 = vector.broadcast %cst_5 : f32 to vector<64x128xf32>
    %7 = arith.cmpf oge, %5, %6 : vector<64x128xf32>
    %cst_6 = arith.constant 1.000000e-01 : f32
    %8 = vector.broadcast %cst_6 : f32 to vector<64x128xf32>
    %9 = arith.mulf %8, %5 : vector<64x128xf32>
    %10 = arith.select %7, %5, %9 : vector<64x128xi1>, vector<64x128xf32>
    %11 = arith.truncf %10 : vector<64x128xf32> to vector<64x128xbf16>
    %c0_7 = arith.constant 0 : index
    %c0_8 = arith.constant 0 : index
    %12 = vector.load %arg4[%c0_7, %c0_8] : memref<64x128xbf16, #tpu.memory_space<vmem>>, vector<64x128xbf16>
    tpu.vector_store %arg4[%c0_7, %c0_8], %11 {strides = array<i32>} : memref<64x128xbf16, #tpu.memory_space<vmem>>, vector<64x128xbf16>,
    return
  }
  func.func @transform_0(%arg0: i32) -> (i32, i32) {
    %c0_i32 = arith.constant 0 : i32
    %c0_i32_0 = arith.constant 0 : i32
    %c0_i32_1 = arith.constant 0 : i32
    return %c0_i32, %c0_i32_0 : i32, i32
  }
  func.func @transform_1(%arg0: i32) -> (i32, i32) {
    %c0_i32 = arith.constant 0 : i32
    %c0_i32_0 = arith.constant 0 : i32
    %c0_i32_1 = arith.constant 0 : i32
    return %c0_i32, %c0_i32_0 : i32, i32
  }
  func.func @transform_2(%arg0: i32) -> (i32, i32) {
    %c0_i32 = arith.constant 0 : i32
    %c0_i32_0 = arith.constant 0 : i32
    return %c0_i32, %arg0 : i32, i32
  }
  func.func @transform_3(%arg0: i32) -> (i32, i32) {
    %c0_i32 = arith.constant 0 : i32
    %c0_i32_0 = arith.constant 0 : i32
    return %c0_i32, %arg0 : i32, i32
  }
}

module attributes {stable_mosaic.version = 11 : i64} {
  func.func @conv_matmul_kernel(%arg0: i32, %arg1: memref<1x640xbf16, #tpu.memory_space<vmem>>, %arg2: memref<1x1xf32, #tpu.memory_space<vmem>>, %arg3: memref<640x128xbf16, #tpu.memory_space<vmem>>, %arg4: memref<1x128xf32, #tpu.memory_space<vmem>>) attributes {dimension_semantics = [#tpu.dimension_semantics<parallel>], iteration_bounds = array<i64: 1>, scalar_prefetch = 0 : i64, scratch_operands = 0 : i64, tpu.core_type = #tpu.core_type<tc>, window_params = [{pipeline_mode = #tpu.pipeline_mode<synchronous>, transform_indices = @transform_0, window_bounds = array<i64: 1, 640>}, {pipeline_mode = #tpu.pipeline_mode<synchronous>, transform_indices = @transform_1, window_bounds = array<i64: 1, 1>}, {transform_indices = @transform_2, window_bounds = array<i64: 640, 128>}, {transform_indices = @transform_3, window_bounds = array<i64: 1, 128>}]} {
    %c0 = arith.constant 0 : index
    %c0_0 = arith.constant 0 : index
    %0 = vector.load %arg1[%c0, %c0_0] : memref<1x640xbf16, #tpu.memory_space<vmem>>, vector<1x640xbf16>
    %c0_1 = arith.constant 0 : index
    %c0_2 = arith.constant 0 : index
    %1 = vector.load %arg3[%c0_1, %c0_2] : memref<640x128xbf16, #tpu.memory_space<vmem>>, vector<640x128xbf16>
    %cst = arith.constant dense<0.000000e+00> : vector<1x128xf32>
    %2 = tpu.matmul %0, %1, %cst {dimension_numbers = #tpu.dot_dimension_numbers<[1], [0], [0], [1], [0, 0, 1, 1], [], []>} : vector<1x640xbf16>, vector<640x128xbf16>, vector<1x128xf32> -> vector<1x128xf32>
    %c0_3 = arith.constant 0 : index
    %c0_4 = arith.constant 0 : index
    %3 = vector.load %arg2[%c0_3, %c0_4] : memref<1x1xf32, #tpu.memory_space<vmem>>, vector<1x1xf32>
    %4 = vector.broadcast %3 : vector<1x1xf32> to vector<1x128xf32>
    %5 = arith.addf %2, %4 : vector<1x128xf32>
    %c0_5 = arith.constant 0 : index
    %c0_6 = arith.constant 0 : index
    %6 = vector.load %arg4[%c0_5, %c0_6] : memref<1x128xf32, #tpu.memory_space<vmem>>, vector<1x128xf32>
    tpu.vector_store %arg4[%c0_5, %c0_6], %5 {strides = array<i32>} : memref<1x128xf32, #tpu.memory_space<vmem>>, vector<1x128xf32>,
    return
  }
  func.func @transform_0(%arg0: i32) -> (i32, i32) {
    %c0_i32 = arith.constant 0 : i32
    %c0_i32_0 = arith.constant 0 : i32
    %c0_i32_1 = arith.constant 0 : i32
    return %c0_i32, %c0_i32_0 : i32, i32
  }
  func.func @transform_1(%arg0: i32) -> (i32, i32) {
    %c0_i32 = arith.constant 0 : i32
    %c0_i32_0 = arith.constant 0 : i32
    %c0_i32_1 = arith.constant 0 : i32
    return %c0_i32, %c0_i32_0 : i32, i32
  }
  func.func @transform_2(%arg0: i32) -> (i32, i32) {
    %c0_i32 = arith.constant 0 : i32
    %c0_i32_0 = arith.constant 0 : i32
    return %c0_i32, %arg0 : i32, i32
  }
  func.func @transform_3(%arg0: i32) -> (i32, i32) {
    %c0_i32 = arith.constant 0 : i32
    %c0_i32_0 = arith.constant 0 : i32
    return %c0_i32, %arg0 : i32, i32
  }
}

</mosaic_0001>

<bundles_post_ra>
// kernel: projected_subdiscriminator.13
= control target key start
LH: loop header
LB: loop body
LE: loop exit
PB: predicated region body
PF: predicated region fallthrough
CT: control target
= control target key end

     0   :  { %s539_s0 = inlined_call_operand.vmem [shape: bf16[16,128], index: 0, kind: input, shape index: {}]   ;;  %s540_s1 = inlined_call_operand.vmem [shape: f32[16,1], index: 1, kind: input, shape index: {}]   ;;  %s541_s2 = inlined_call_operand.vmem [shape: bf16[64,98], index: 2, kind: input, shape index: {}]   ;;  %s542_s3 = inlined_call_operand.<no memory space> [shape: bf16[], index: 3, kind: input, shape index: {}]   ;;  %s543_s4 = inlined_call_operand.vmem [shape: bf16[16,128], index: 4, kind: output, shape index: {}]  }
   0x1   :  { %v9_v0 = vstv %s542_s3 }
   0x2   :  { %v10_v1 = vunpack.i.l.bf16 %v9_v0 }
   0x3   :  { %v29_v2 = vld [vmem:[%s541_s2] sm:$0xff]   ;;  %v32_v3 = vlaneseq  ;;  %v373_v4 = vld [vmem:[%s541_s2 + $0x8] sm:$0xff]   ;;  %v375_v5 = vld [vmem:[%s541_s2 + $0x10] sm:$0xff]   ;;  %v459_v7 = vmov 0.0   ;;  %vm460_vm0 = vmmov 0   ;;  %v461_v19 = vmov 0  }
   0x4   :  { %v395_v6 = vpack.c.bf16 %v10_v1, %v10_v1  ;;  %426 = vmatprep.subr.bf16.mxu0 %v459_v7  ;;  %v30_v8 = vunpack.c.l.bf16 %v29_v2  ;;  %v51_v9 = vunpack.c.h.bf16 %v29_v2  ;;  %v73_v10 = vunpack.c.l.bf16 %v373_v4  ;;  %v377_v12 = vld [vmem:[%s541_s2 + $0x18] sm:$0xff]   ;;  %442 = vmatprep.mubr.msk.bf16.mxu0 %vm460_vm0, %v459_v7  ;;  %v245_v15 = vld [vmem:[%s540_s1] sm:$0xff]  ;;  %v246_v28 = vld [vmem:[%s540_s1 + $0x8] sm:$0xff] }
   0x5   :  { %v95_v11 = vunpack.c.h.bf16 %v373_v4  ;;  %v33_v13 = vand.u32 127, %v32_v3  ;;  %v117_v14 = vunpack.c.l.bf16 %v375_v5  ;;  %v139_v16 = vunpack.c.h.bf16 %v375_v5  ;;  %449 = vset.pattern.permute.xlu0 %v461_v19  ;;  %v458_v45 = vld [vmem:[%s539_s0] sm:$0xff]  }
   0x6   :  { %396 = vst [vmem:[#allocation7 + $0x20] sm:$0xff] %v395_v6   ;;  %401 = vst [vmem:[#allocation7 + $0x28] sm:$0xff] %v395_v6   ;;  %v161_v17 = vunpack.c.l.bf16 %v377_v12  ;;  %v183_v18 = vunpack.c.h.bf16 %v377_v12  ;;  %249 = vperm.xlu0 %449, %v245_v15  }
   0x7   :  { %406 = vst [vmem:[#allocation7 + $0x30] sm:$0xff] %v395_v6   ;;  %411 = vst [vmem:[#allocation7 + $0x38] sm:$0xff] %v395_v6   ;;  %vm35_vm1 = vcmp.lt.s32.totalorder %v33_v13, 98 }
   0x8   :  { %v36_v20 = vsel %vm35_vm1, %v30_v8, %v10_v1  ;;  %v57_v21 = vsel %vm35_vm1, %v51_v9, %v10_v1  ;;  %v79_v22 = vsel %vm35_vm1, %v73_v10, %v10_v1  ;;  %v101_v23 = vsel %vm35_vm1, %v95_v11, %v10_v1 }
   0x9   :  { %v37_v24 = vpack.c.bf16 %v459_v7, %v36_v20  ;;  %v59_v25 = vpack.c.bf16 %v459_v7, %v57_v21  ;;  %v81_v26 = vpack.c.bf16 %v459_v7, %v79_v22  ;;  %v103_v27 = vpack.c.bf16 %v459_v7, %v101_v23 }
   0xa   :  { %v123_v29 = vsel %vm35_vm1, %v117_v14, %v10_v1  ;;  %v145_v30 = vsel %vm35_vm1, %v139_v16, %v10_v1  ;;  %v167_v31 = vsel %vm35_vm1, %v161_v17, %v10_v1  ;;  %v189_v32 = vsel %vm35_vm1, %v183_v18, %v10_v1  ;;  %254 = vperm.xlu0 %449, %v246_v28  }
   0xb   :  { %39 = vst [vmem:[#allocation7] sm:$0xf] %v37_v24  ;;  %61 = vst [vmem:[#allocation7 + $0x4] sm:$0xf] %v59_v25  ;;  %v125_v33 = vpack.c.bf16 %v459_v7, %v123_v29  ;;  %v147_v34 = vpack.c.bf16 %v459_v7, %v145_v30  ;;  %v169_v35 = vpack.c.bf16 %v459_v7, %v167_v31 }
   0xc   :  { %83 = vst [vmem:[#allocation7 + $0x8] sm:$0xf] %v81_v26  ;;  %105 = vst [vmem:[#allocation7 + $0xc] sm:$0xf] %v103_v27  ;;  %v191_v36 = vpack.c.bf16 %v459_v7, %v189_v32 }
   0xd   :  { %127 = vst [vmem:[#allocation7 + $0x10] sm:$0xf] %v125_v33  ;;  %149 = vst [vmem:[#allocation7 + $0x14] sm:$0xf] %v147_v34  ;;  %v454_v41 = vld [vmem:[#allocation7 + $0x20] sm:$0xff]   ;;  %v455_v42 = vld [vmem:[#allocation7 + $0x28] sm:$0xff]  }
   0xe   :  { %171 = vst [vmem:[#allocation7 + $0x18] sm:$0xf] %v169_v35  ;;  %193 = vst [vmem:[#allocation7 + $0x1c] sm:$0xf] %v191_v36  ;;  %v456_v43 = vld [vmem:[#allocation7 + $0x30] sm:$0xff]   ;;  %v457_v44 = vld [vmem:[#allocation7 + $0x38] sm:$0xff]  }
  0x12   :  { %v450_v37 = vld [vmem:[#allocation7] sm:$0xff]  }
  0x13   :  { %427 = vmatpush3.bf16.msra.mxu0 %v450_v37  ;;  %v451_v38 = vld [vmem:[#allocation7 + $0x8] sm:$0xff]  }
  0x14   :  { %428 = vmatprep.subr.bf16.mxu0 %v459_v7  ;;  %v452_v39 = vld [vmem:[#allocation7 + $0x10] sm:$0xff]  }
  0x15   :  { %v453_v40 = vld [vmem:[#allocation7 + $0x18] sm:$0xff]  }
  0x17   :  { %429 = vmatpush3.bf16.msra.mxu0 %v451_v38 }
  0x18   :  { %430 = vmatprep.subr.bf16.mxu0 %v459_v7 }
  0x1b   :  { %431 = vmatpush3.bf16.msra.mxu0 %v452_v39 }
  0x1c   :  { %432 = vmatprep.subr.bf16.mxu0 %v459_v7 }
  0x1f   :  { %433 = vmatpush3.bf16.msra.mxu0 %v453_v40 }
  0x20   :  { %434 = vmatprep.subr.bf16.mxu0 %v459_v7 }
  0x23   :  { %435 = vmatpush3.bf16.msra.mxu0 %v454_v41 }
  0x24   :  { %436 = vmatprep.subr.bf16.mxu0 %v459_v7 }
  0x27   :  { %437 = vmatpush3.bf16.msra.mxu0 %v455_v42 }
  0x28   :  { %438 = vmatprep.subr.bf16.mxu0 %v459_v7 }
  0x2b   :  { %439 = vmatpush3.bf16.msra.mxu0 %v456_v43 }
  0x2c   :  { %440 = vmatprep.subr.bf16.mxu0 %v459_v7 }
  0x2f   :  { %441 = vmatpush3.bf16.msra.mxu0 %v457_v44 }
  0x32   :  { %443 = vmatmul.mubr.bf16.vlgmr.msra.gmra.mrb[0].mxu0 %v458_v45 }
  0x85   :  { %v250_v46 = vpop.permute.xlu0 %249 }
  0x89   :  { %v255_v50 = vpop.permute.xlu0 %254 }
 0x105   :  { %v345_v47 = vpop.f32.mrb[0].mxu0 }
 0x106   :  { %v346_v48 = vadd.f32 %v345_v47, %v250_v46  ;;  %v444_v49 = vpop.f32.mrb[1].mxu0 }
 0x107   :  { %v348_v51 = vpop.f32.mrb[2].mxu0 }
 0x108   :  { %v354_v52 = vmul.f32 0.1, %v346_v48  ;;  %v349_v53 = vadd.f32 %v348_v51, %v255_v50  ;;  %v445_v54 = vpop.f32.mrb[3].mxu0  ;;  %vm352_vm2 = vcmp.ge.f32.partialorder %v346_v48, 0.0 }
 0x10a   :  { %vm353_vm3 = vcmp.ge.f32.partialorder %v349_v53, 0.0  ;;  %v355_v55 = vmul.f32 0.1, %v349_v53  ;;  %v356_v56 = vsel %vm352_vm2, %v346_v48, %v354_v52 }
 0x10c   :  { %v357_v57 = vsel %vm353_vm3, %v349_v53, %v355_v55 }
 0x10d   :  { %v415_v58 = vpack.c.bf16 %v357_v57, %v356_v56 }
 0x10f   :  { %416 = vst [vmem:[%s543_s4] sm:$0xff] %v415_v58  }

// kernel: projected_subdiscriminator.12
= control target key start
LH: loop header
LB: loop body
LE: loop exit
PB: predicated region body
PF: predicated region fallthrough
CT: control target
= control target key end

     0   :  { %s1264_s0 = inlined_call_operand.vmem [shape: bf16[16,256], index: 0, kind: input, shape index: {}]   ;;  %s1265_s1 = inlined_call_operand.vmem [shape: f32[16,1], index: 1, kind: input, shape index: {}]   ;;  %s1266_s2 = inlined_call_operand.vmem [shape: bf16[256,8], index: 2, kind: input, shape index: {}]   ;;  %s1267_s3 = inlined_call_operand.<no memory space> [shape: bf16[], index: 3, kind: input, shape index: {}]   ;;  %s1268_s4 = inlined_call_operand.vmem [shape: bf16[16,128], index: 4, kind: output, shape index: {}]  }
   0x1   :  { %v9_v0 = vstv %s1267_s3 }
   0x2   :  { %v1068_v1 = vunpack.i.l.bf16 %v9_v0 }
   0x3   :  { %v32_v2 = vlaneseq  ;;  %v951_v3 = vld [vmem:[%s1266_s2 + $0x40] sm:$0xff]   ;;  %v953_v5 = vld [vmem:[%s1266_s2 + $0x48] sm:$0xff]   ;;  %v955_v11 = vld [vmem:[%s1266_s2 + $0x50] sm:$0xff]   ;;  %v1038_v13 = vmov 0   ;;  %v1039_v30 = vmov 0.0  }
   0x4   :  { %v29_v4 = vld [vmem:[%s1266_s2] sm:$0xff]   ;;  %v381_v6 = vunpack.c.l.bf16 %v951_v3  ;;  %v403_v7 = vunpack.c.h.bf16 %v951_v3  ;;  %v937_v10 = vld [vmem:[%s1266_s2 + $0x8] sm:$0xff]   ;;  %v939_v12 = vld [vmem:[%s1266_s2 + $0x10] sm:$0xff]   ;;  %1018 = vset.pattern.permute.xlu0 %v1038_v13  ;;  %v425_v15 = vunpack.c.l.bf16 %v953_v5  ;;  %v447_v16 = vunpack.c.h.bf16 %v953_v5 }
   0x5   :  { %v30_v8 = vunpack.c.l.bf16 %v29_v4  ;;  %v51_v9 = vunpack.c.h.bf16 %v29_v4  ;;  %v1088_v14 = vand.u32 127, %v32_v2  ;;  %v73_v17 = vunpack.c.l.bf16 %v937_v10  ;;  %v957_v18 = vld [vmem:[%s1266_s2 + $0x58] sm:$0xff]   ;;  %v1037_v35 = vld [vmem:[%s1264_s0 + $0x4] ss:$8 sps:$4 sm:$0xff]   ;;  %v947_v13 = vld [vmem:[%s1266_s2 + $0x30] sm:$0xff]  }
   0x6   :  { %v95_v19 = vunpack.c.h.bf16 %v937_v10  ;;  %v469_v20 = vunpack.c.l.bf16 %v955_v11  ;;  %v491_v21 = vunpack.c.h.bf16 %v955_v11  ;;  %v117_v22 = vunpack.c.l.bf16 %v939_v12  ;;  %v757_v36 = vld [vmem:[%s1265_s1] sm:$0xff]  ;;  %v941_v45 = vld [vmem:[%s1266_s2 + $0x18] sm:$0xff]   ;;  %907 = vmatprep.mubr.bf16.mxu0 %v1037_v35  ;;  %v758_v46 = vld [vmem:[%s1265_s1 + $0x8] sm:$0xff] }
   0x7   :  { %vm35_vm0 = vcmp.lt.s32.totalorder %v1088_v14, 8  ;;  %v139_v23 = vunpack.c.h.bf16 %v939_v12  ;;  %v513_v24 = vunpack.c.l.bf16 %v957_v18  ;;  %v535_v25 = vunpack.c.h.bf16 %v957_v18  ;;  %761 = vperm.xlu0 %1018, %v757_v36   ;;  %v959_v51 = vld [vmem:[%s1266_s2 + $0x60] sm:$0xff]   ;;  %v945_v11 = vld [vmem:[%s1266_s2 + $0x28] sm:$0xff]   ;;  %v963_v12 = vld [vmem:[%s1266_s2 + $0x70] sm:$0xff]  }
   0x8   :  { %v387_v26 = vsel %vm35_vm0, %v381_v6, %v1068_v1  ;;  %v409_v27 = vsel %vm35_vm0, %v403_v7, %v1068_v1  ;;  %v36_v28 = vsel %vm35_vm0, %v30_v8, %v1068_v1  ;;  %v57_v29 = vsel %vm35_vm0, %v51_v9, %v1068_v1  ;;  %v943_v56 = vld [vmem:[%s1266_s2 + $0x20] sm:$0xff]   ;;  %v961_v6 = vld [vmem:[%s1266_s2 + $0x68] sm:$0xff]  }
   0x9   :  { %v389_v31 = vpack.c.bf16 %v1039_v30, %v387_v26  ;;  %v411_v32 = vpack.c.bf16 %v1039_v30, %v409_v27  ;;  %v37_v33 = vpack.c.bf16 %v1039_v30, %v36_v28  ;;  %v59_v34 = vpack.c.bf16 %v1039_v30, %v57_v29 }
   0xa   :  { %v431_v37 = vsel %vm35_vm0, %v425_v15, %v1068_v1  ;;  %v453_v38 = vsel %vm35_vm0, %v447_v16, %v1068_v1  ;;  %v79_v39 = vsel %vm35_vm0, %v73_v17, %v1068_v1  ;;  %v101_v40 = vsel %vm35_vm0, %v95_v19, %v1068_v1 }
   0xb   :  { %391 = vst [vmem:[#allocation7 + $0x40] sm:$0xf] %v389_v31  ;;  %413 = vst [vmem:[#allocation7 + $0x44] sm:$0xf] %v411_v32  ;;  %v433_v41 = vpack.c.bf16 %v1039_v30, %v431_v37  ;;  %v455_v42 = vpack.c.bf16 %v1039_v30, %v453_v38  ;;  %v81_v43 = vpack.c.bf16 %v1039_v30, %v79_v39  ;;  %v161_v59 = vunpack.c.l.bf16 %v941_v45  ;;  %v965_v31 = vld [vmem:[%s1266_s2 + $0x78] sm:$0xff]  }
   0xc   :  { %39 = vst [vmem:[#allocation7] sm:$0xf] %v37_v33  ;;  %61 = vst [vmem:[#allocation7 + $0x4] sm:$0xf] %v59_v34  ;;  %v103_v44 = vpack.c.bf16 %v1039_v30, %v101_v40  ;;  %v475_v47 = vsel %vm35_vm0, %v469_v20, %v1068_v1  ;;  %v497_v48 = vsel %vm35_vm0, %v491_v21, %v1068_v1  ;;  %v183_v60 = vunpack.c.h.bf16 %v941_v45 }
   0xd   :  { %v123_v49 = vsel %vm35_vm0, %v117_v22, %v1068_v1  ;;  %v145_v50 = vsel %vm35_vm0, %v139_v23, %v1068_v1  ;;  %435 = vst [vmem:[#allocation7 + $0x48] sm:$0xf] %v433_v41  ;;  %457 = vst [vmem:[#allocation7 + $0x4c] sm:$0xf] %v455_v42  ;;  %v477_v52 = vpack.c.bf16 %v1039_v30, %v475_v47  ;;  %766 = vperm.xlu0 %1018, %v758_v46   ;;  %v949_v46 = vld [vmem:[%s1266_s2 + $0x38] sm:$0xff]  }
   0xe   :  { %83 = vst [vmem:[#allocation7 + $0x8] sm:$0xf] %v81_v43  ;;  %105 = vst [vmem:[#allocation7 + $0xc] sm:$0xf] %v103_v44  ;;  %v499_v53 = vpack.c.bf16 %v1039_v30, %v497_v48  ;;  %v125_v54 = vpack.c.bf16 %v1039_v30, %v123_v49  ;;  %v147_v55 = vpack.c.bf16 %v1039_v30, %v145_v50  ;;  %v557_v63 = vunpack.c.l.bf16 %v959_v51 }
   0xf   :  { %v519_v57 = vsel %vm35_vm0, %v513_v24, %v1068_v1  ;;  %v541_v58 = vsel %vm35_vm0, %v535_v25, %v1068_v1  ;;  %479 = vst [vmem:[#allocation7 + $0x50] sm:$0xf] %v477_v52  ;;  %v579_v0 = vunpack.c.h.bf16 %v959_v51  ;;  %v167_v2 = vsel %vm35_vm0, %v161_v59, %v1068_v1 }
  0x10   :  { %501 = vst [vmem:[#allocation7 + $0x54] sm:$0xf] %v499_v53  ;;  %127 = vst [vmem:[#allocation7 + $0x10] sm:$0xf] %v125_v54  ;;  %v521_v61 = vpack.c.bf16 %v1039_v30, %v519_v57  ;;  %v543_v62 = vpack.c.bf16 %v1039_v30, %v541_v58  ;;  %v189_v3 = vsel %vm35_vm0, %v183_v60, %v1068_v1  ;;  %v205_v4 = vunpack.c.l.bf16 %v943_v56 }
  0x11   :  { %149 = vst [vmem:[#allocation7 + $0x14] sm:$0xf] %v147_v55  ;;  %v227_v5 = vunpack.c.h.bf16 %v943_v56  ;;  %v169_v7 = vpack.c.bf16 %v1039_v30, %v167_v2  ;;  %v191_v8 = vpack.c.bf16 %v1039_v30, %v189_v3  ;;  %v563_v9 = vsel %vm35_vm0, %v557_v63, %v1068_v1 }
  0x12   :  { %523 = vst [vmem:[#allocation7 + $0x58] sm:$0xf] %v521_v61  ;;  %545 = vst [vmem:[#allocation7 + $0x5c] sm:$0xf] %v543_v62  ;;  %v585_v10 = vsel %vm35_vm0, %v579_v0, %v1068_v1  ;;  %v1019_v15 = vld [vmem:[#allocation7 + $0x40] sm:$0xff]   ;;  %v565_v16 = vpack.c.bf16 %v1039_v30, %v563_v9  ;;  %v211_v18 = vsel %vm35_vm0, %v205_v4, %v1068_v1  ;;  %v601_v23 = vunpack.c.l.bf16 %v961_v6 }
  0x13   :  { %v587_v17 = vpack.c.bf16 %v1039_v30, %v585_v10  ;;  %v233_v19 = vsel %vm35_vm0, %v227_v5, %v1068_v1  ;;  %v1020_v20 = vld [vmem:[#allocation7] sm:$0xff]   ;;  %171 = vst [vmem:[#allocation7 + $0x18] sm:$0xf] %v169_v7  ;;  %193 = vst [vmem:[#allocation7 + $0x1c] sm:$0xf] %v191_v8  ;;  %v213_v21 = vpack.c.bf16 %v1039_v30, %v211_v18  ;;  %v623_v24 = vunpack.c.h.bf16 %v961_v6 }
  0x14   :  { %v235_v22 = vpack.c.bf16 %v1039_v30, %v233_v19  ;;  %994 = vmatprep.subr.bf16.mxu0 %v1019_v15  ;;  %v1021_v25 = vld [vmem:[#allocation7 + $0x48] sm:$0xff]   ;;  %567 = vst [vmem:[#allocation7 + $0x60] sm:$0xf] %v565_v16  ;;  %v249_v26 = vunpack.c.l.bf16 %v945_v11  ;;  %v271_v27 = vunpack.c.h.bf16 %v945_v11  ;;  %v645_v28 = vunpack.c.l.bf16 %v963_v12 }
  0x15   :  { %589 = vst [vmem:[#allocation7 + $0x64] sm:$0xf] %v587_v17  ;;  %v667_v29 = vunpack.c.h.bf16 %v963_v12  ;;  %995 = vmatpush3.bf16.msra.mxu0 %v1020_v20  ;;  %v1022_v32 = vld [vmem:[#allocation7 + $0x8] sm:$0xff]   ;;  %215 = vst [vmem:[#allocation7 + $0x20] sm:$0xf] %v213_v21  ;;  %v607_v33 = vsel %vm35_vm0, %v601_v23, %v1068_v1  ;;  %v629_v34 = vsel %vm35_vm0, %v623_v24, %v1068_v1  ;;  %v293_v35 = vunpack.c.l.bf16 %v947_v13 }
  0x16   :  { %237 = vst [vmem:[#allocation7 + $0x24] sm:$0xf] %v235_v22  ;;  %v315_v36 = vunpack.c.h.bf16 %v947_v13  ;;  %996 = vmatprep.subr.bf16.mxu0 %v1021_v25  ;;  %v609_v38 = vpack.c.bf16 %v1039_v30, %v607_v33  ;;  %v631_v39 = vpack.c.bf16 %v1039_v30, %v629_v34  ;;  %v255_v40 = vsel %vm35_vm0, %v249_v26, %v1068_v1  ;;  %v1035_v10 = vld [vmem:[%s1264_s0] ss:$8 sps:$4 sm:$0xff]  }
  0x17   :  { %v1023_v37 = vld [vmem:[#allocation7 + $0x50] sm:$0xff]   ;;  %v277_v41 = vsel %vm35_vm0, %v271_v27, %v1068_v1  ;;  %v257_v42 = vpack.c.bf16 %v1039_v30, %v255_v40  ;;  %v651_v44 = vsel %vm35_vm0, %v645_v28, %v1068_v1  ;;  %v673_v45 = vsel %vm35_vm0, %v667_v29, %v1068_v1 }
  0x18   :  { %v279_v43 = vpack.c.bf16 %v1039_v30, %v277_v41  ;;  %611 = vst [vmem:[#allocation7 + $0x68] sm:$0xf] %v609_v38  ;;  %633 = vst [vmem:[#allocation7 + $0x6c] sm:$0xf] %v631_v39  ;;  %v653_v47 = vpack.c.bf16 %v1039_v30, %v651_v44  ;;  %v675_v48 = vpack.c.bf16 %v1039_v30, %v673_v45  ;;  %v1024_v51 = vld [vmem:[#allocation7 + $0x10] sm:$0xff]   ;;  %v689_v54 = vunpack.c.l.bf16 %v965_v31 }
  0x19   :  { %v299_v49 = vsel %vm35_vm0, %v293_v35, %v1068_v1  ;;  %v321_v50 = vsel %vm35_vm0, %v315_v36, %v1068_v1  ;;  %997 = vmatpush3.bf16.msra.mxu0 %v1022_v32  ;;  %259 = vst [vmem:[#allocation7 + $0x28] sm:$0xf] %v257_v42  ;;  %v711_v55 = vunpack.c.h.bf16 %v965_v31  ;;  %v1025_v56 = vld [vmem:[#allocation7 + $0x58] sm:$0xff]   ;;  %v337_v57 = vunpack.c.l.bf16 %v949_v46 }
  0x1a   :  { %281 = vst [vmem:[#allocation7 + $0x2c] sm:$0xf] %v279_v43  ;;  %v301_v52 = vpack.c.bf16 %v1039_v30, %v299_v49  ;;  %v323_v53 = vpack.c.bf16 %v1039_v30, %v321_v50  ;;  %998 = vmatprep.subr.bf16.mxu0 %v1023_v37  ;;  %655 = vst [vmem:[#allocation7 + $0x70] sm:$0xf] %v653_v47  ;;  %v359_v58 = vunpack.c.h.bf16 %v949_v46  ;;  %v1026_v2 = vld [vmem:[#allocation7 + $0x18] sm:$0xff]  }
  0x1b   :  { %677 = vst [vmem:[#allocation7 + $0x74] sm:$0xf] %v675_v48  ;;  %v695_v59 = vsel %vm35_vm0, %v689_v54, %v1068_v1  ;;  %v717_v60 = vsel %vm35_vm0, %v711_v55, %v1068_v1  ;;  %v343_v63 = vsel %vm35_vm0, %v337_v57, %v1068_v1 }
  0x1c   :  { %303 = vst [vmem:[#allocation7 + $0x30] sm:$0xf] %v301_v52  ;;  %325 = vst [vmem:[#allocation7 + $0x34] sm:$0xf] %v323_v53  ;;  %v697_v61 = vpack.c.bf16 %v1039_v30, %v695_v59  ;;  %v719_v62 = vpack.c.bf16 %v1039_v30, %v717_v60  ;;  %v365_v0 = vsel %vm35_vm0, %v359_v58, %v1068_v1  ;;  %v1027_v5 = vld [vmem:[#allocation7 + $0x60] sm:$0xff]  }
  0x1d   :  { %999 = vmatpush3.bf16.msra.mxu0 %v1024_v51  ;;  %v345_v3 = vpack.c.bf16 %v1039_v30, %v343_v63  ;;  %v367_v4 = vpack.c.bf16 %v1039_v30, %v365_v0  ;;  %v1028_v6 = vld [vmem:[#allocation7 + $0x20] sm:$0xff]  }
  0x1e   :  { %1000 = vmatprep.subr.bf16.mxu0 %v1025_v56  ;;  %699 = vst [vmem:[#allocation7 + $0x78] sm:$0xf] %v697_v61  ;;  %721 = vst [vmem:[#allocation7 + $0x7c] sm:$0xf] %v719_v62 }
  0x1f   :  { %347 = vst [vmem:[#allocation7 + $0x38] sm:$0xf] %v345_v3  ;;  %369 = vst [vmem:[#allocation7 + $0x3c] sm:$0xf] %v367_v4  ;;  %v1029_v7 = vld [vmem:[#allocation7 + $0x68] sm:$0xff]  }
  0x21   :  { %1001 = vmatpush3.bf16.msra.mxu0 %v1026_v2  ;;  %v1030_v8 = vld [vmem:[#allocation7 + $0x28] sm:$0xff]  }
  0x22   :  { %1002 = vmatprep.subr.bf16.mxu0 %v1027_v5  ;;  %v1031_v1 = vld [vmem:[#allocation7 + $0x70] sm:$0xff]  }
  0x23   :  { %v1032_v14 = vld [vmem:[#allocation7 + $0x30] sm:$0xff]  }
  0x25   :  { %1003 = vmatpush3.bf16.msra.mxu0 %v1028_v6  ;;  %v1033_v9 = vld [vmem:[#allocation7 + $0x78] sm:$0xff]  }
  0x26   :  { %1004 = vmatprep.subr.bf16.mxu0 %v1029_v7  ;;  %v1034_v30 = vld [vmem:[#allocation7 + $0x38] sm:$0xff]  }
  0x29   :  { %1005 = vmatpush3.bf16.msra.mxu0 %v1030_v8 }
  0x2a   :  { %1006 = vmatprep.subr.bf16.mxu0 %v1031_v1 }
  0x2d   :  { %1007 = vmatpush3.bf16.msra.mxu0 %v1032_v14 }
  0x2e   :  { %1008 = vmatprep.subr.bf16.mxu0 %v1033_v9 }
  0x31   :  { %1009 = vmatpush3.bf16.msra.mxu0 %v1034_v30 }
  0x34   :  { %908 = vmatmul.mubr.bf16.vlgmr.msra.gmra.mrb[0].mxu0 %v1035_v10 }
  0x86   :  { %v762_v11 = vpop.permute.xlu0 %761 }
  0x8c   :  { %v767_v20 = vpop.permute.xlu0 %766 }
 0x107   :  { %v1010_v12 = vpop.f32.mrb[0].mxu0 }
 0x108   :  { %v1011_v13 = vpop.f32.mrb[1].mxu0 }
 0x109   :  { %v1012_v15 = vadd.f32 %v1011_v13, %v1010_v12  ;;  %v1013_v16 = vpop.f32.mrb[2].mxu0 }
 0x10a   :  { %v1014_v17 = vpop.f32.mrb[3].mxu0 }
 0x10b   :  { %v910_v18 = vadd.f32 %v1012_v15, %v762_v11  ;;  %v1015_v19 = vadd.f32 %v1014_v17, %v1013_v16 }
 0x10d   :  { %v918_v21 = vmul.f32 0.1, %v910_v18  ;;  %v913_v22 = vadd.f32 %v1015_v19, %v767_v20  ;;  %vm916_vm1 = vcmp.ge.f32.partialorder %v910_v18, 0.0 }
 0x10f   :  { %vm917_vm2 = vcmp.ge.f32.partialorder %v913_v22, 0.0  ;;  %v919_v23 = vmul.f32 0.1, %v913_v22  ;;  %v920_v24 = vsel %vm916_vm1, %v910_v18, %v918_v21 }
 0x111   :  { %v921_v25 = vsel %vm917_vm2, %v913_v22, %v919_v23 }
 0x112   :  { %v992_v26 = vpack.c.bf16 %v921_v25, %v920_v24 }
 0x114   :  { %993 = vst [vmem:[%s1268_s4] sm:$0xff] %v992_v26  }

// kernel: projected_subdiscriminator.9
= control target key start
LH: loop header
LB: loop body
LE: loop exit
PB: predicated region body
PF: predicated region fallthrough
CT: control target
= control target key end

     0   :  { %vm40_vm0 = vcmask 25600   ;;  %vm442_vm3 = vcmask 24576   ;;  %vm443_vm4 = vsmask.f32 256  ;;  %s990_s0 = inlined_call_operand.vmem [shape: bf16[16,2,4], index: 0, kind: input, shape index: {}]   ;;  %s991_s1 = inlined_call_operand.vmem [shape: bf16[16,1,4], index: 1, kind: output, shape index: {}]  }
   0x1   :  { %v542_v0 = vld [vmem:[%s990_s0] sm:$0x1]  ;;  %v548_v2 = vld [vmem:[%s990_s0 + $0x1] sm:$0x1]  ;;  %v553_v3 = vld [vmem:[%s990_s0 + $0x2] sm:$0x1] }
   0x2   :  { %v24_v1 = vunpack.c.l.bf16 %v542_v0  ;;  %v25_v4 = vunpack.c.l.bf16 %v548_v2  ;;  %v26_v5 = vunpack.c.l.bf16 %v553_v3  ;;  %v560_v6 = vld [vmem:[%s990_s0 + $0x3] sm:$0x1]  ;;  %v569_v9 = vld [vmem:[%s990_s0 + $0x4] sm:$0x1]  ;;  %v581_v14 = vld [vmem:[%s990_s0 + $0x5] sm:$0x1] }
   0x3   :  { %v27_v8 = vunpack.c.l.bf16 %v560_v6  ;;  %v28_v13 = vunpack.c.l.bf16 %v569_v9  ;;  %v29_v18 = vunpack.c.l.bf16 %v581_v14  ;;  %v593_v22 = vld [vmem:[%s990_s0 + $0x6] sm:$0x1]  ;;  %v601_v27 = vld [vmem:[%s990_s0 + $0x7] sm:$0x1]  ;;  %vm722_vm15 = vmand %vm442_vm3, %vm443_vm4 }
   0x4   :  { %v41_v7 = vsel %vm40_vm0, %v24_v1, 0.0  ;;  %v48_v11 = vsel %vm40_vm0, %v25_v4, 0.0  ;;  %v55_v12 = vsel %vm40_vm0, %v26_v5, 0.0  ;;  %v30_v31 = vunpack.c.l.bf16 %v593_v22 }
   0x5   :  { %v42_v10 = vrot.slane %v41_v7, 4  ;;  %v49_v15 = vrot.slane %v48_v11, 4  ;;  %v56_v16 = vrot.slane %v55_v12, 4  ;;  %v62_v17 = vsel %vm40_vm0, %v27_v8, 0.0 }
   0x6   :  { %v63_v20 = vrot.slane %v62_v17, 4  ;;  %v69_v21 = vsel %vm40_vm0, %v28_v13, 0.0  ;;  %v76_v26 = vsel %vm40_vm0, %v29_v18, 0.0  ;;  %v31_v35 = vunpack.c.l.bf16 %v601_v27 }
   0x7   :  { %v43_v19 = vadd.f32 %v42_v10, %v41_v7  ;;  %v50_v23 = vadd.f32 %v49_v15, %v48_v11  ;;  %v57_v24 = vadd.f32 %v56_v16, %v55_v12  ;;  %v70_v25 = vrot.slane %v69_v21, 4 }
   0x8   :  { %v64_v29 = vadd.f32 %v63_v20, %v62_v17  ;;  %v77_v30 = vrot.slane %v76_v26, 4  ;;  %v83_v39 = vsel %vm40_vm0, %v30_v31, 0.0  ;;  %v90_v47 = vsel %vm40_vm0, %v31_v35, 0.0 }
   0x9   :  { %v44_v28 = vrot.slane %v43_v19, 2  ;;  %v51_v32 = vrot.slane %v50_v23, 2  ;;  %v58_v33 = vrot.slane %v57_v24, 2  ;;  %v71_v34 = vadd.f32 %v70_v25, %v69_v21 }
   0xa   :  { %v65_v37 = vrot.slane %v64_v29, 2  ;;  %v78_v38 = vadd.f32 %v77_v30, %v76_v26  ;;  %v84_v43 = vrot.slane %v83_v39, 4  ;;  %v91_v55 = vrot.slane %v90_v47, 4 }
   0xb   :  { %v45_v36 = vadd.f32 %v44_v28, %v43_v19  ;;  %v52_v40 = vadd.f32 %v51_v32, %v50_v23  ;;  %v59_v41 = vadd.f32 %v58_v33, %v57_v24  ;;  %v72_v42 = vrot.slane %v71_v34, 2 }
   0xc   :  { %v66_v45 = vadd.f32 %v65_v37, %v64_v29  ;;  %v79_v46 = vrot.slane %v78_v38, 2  ;;  %v85_v51 = vadd.f32 %v84_v43, %v83_v39  ;;  %v92_v63 = vadd.f32 %v91_v55, %v90_v47 }
   0xd   :  { %v46_v44 = vrot.slane %v45_v36, 1  ;;  %v53_v48 = vrot.slane %v52_v40, 1  ;;  %v60_v49 = vrot.slane %v59_v41, 1  ;;  %v73_v50 = vadd.f32 %v72_v42, %v71_v34 }
   0xe   :  { %v67_v53 = vrot.slane %v66_v45, 1  ;;  %v80_v54 = vadd.f32 %v79_v46, %v78_v38  ;;  %v86_v59 = vrot.slane %v85_v51, 2  ;;  %v93_v19 = vrot.slane %v92_v63, 2 }
   0xf   :  { %v47_v52 = vadd.f32 %v46_v44, %v45_v36  ;;  %v54_v56 = vadd.f32 %v53_v48, %v52_v40  ;;  %v61_v57 = vadd.f32 %v60_v49, %v59_v41  ;;  %v74_v58 = vrot.slane %v73_v50, 1 }
  0x10   :  { %v68_v61 = vadd.f32 %v67_v53, %v66_v45  ;;  %v81_v62 = vrot.slane %v80_v54, 1  ;;  %v87_v12 = vadd.f32 %v86_v59, %v85_v51  ;;  %v94_v29 = vadd.f32 %v93_v19, %v92_v63 }
  0x11   :  { %v154_v60 = vmul.f32 0.5, %v47_v52  ;;  %v155_v7 = vmul.f32 0.5, %v54_v56  ;;  %v156_v10 = vmul.f32 0.5, %v61_v57  ;;  %v75_v11 = vadd.f32 %v74_v58, %v73_v50 }
  0x12   :  { %v157_v16 = vmul.f32 0.5, %v68_v61  ;;  %v82_v17 = vadd.f32 %v81_v62, %v80_v54  ;;  %v88_v24 = vrot.slane %v87_v12, 1 }
  0x13   :  { %v170_v15 = vsub.f32 %v24_v1, %v154_v60  ;;  %v171_v20 = vsub.f32 %v25_v4, %v155_v7  ;;  %v172_v21 = vsub.f32 %v26_v5, %v156_v10  ;;  %v158_v23 = vmul.f32 0.5, %v75_v11 }
  0x14   :  { %v173_v26 = vsub.f32 %v27_v8, %v157_v16  ;;  %v159_v28 = vmul.f32 0.5, %v82_v17  ;;  %v89_v32 = vadd.f32 %v88_v24, %v87_v12  ;;  %v95_v5 = vrot.slane %v94_v29, 1  ;;  %v650_v24 = vld [vmem:[%s990_s0 + $0x9] sm:$0x1] }
  0x15   :  { %v186_v25 = vmul.f32 %v170_v15, %v170_v15  ;;  %v187_v30 = vmul.f32 %v171_v20, %v171_v20  ;;  %v188_v0 = vmul.f32 %v172_v21, %v172_v21  ;;  %v174_v1 = vsub.f32 %v28_v13, %v158_v23  ;;  %v645_v23 = vld [vmem:[%s990_s0 + $0x8] sm:$0x1] }
  0x16   :  { %v189_v4 = vmul.f32 %v173_v26, %v173_v26  ;;  %v175_v3 = vsub.f32 %v29_v18, %v159_v28  ;;  %v160_v41 = vmul.f32 0.5, %v89_v32  ;;  %v96_v51 = vadd.f32 %v95_v5, %v94_v29 }
  0x17   :  { %v202_v2 = vsel %vm40_vm0, %v186_v25, 0.0  ;;  %v209_v34 = vsel %vm40_vm0, %v187_v30, 0.0  ;;  %v216_v6 = vsel %vm40_vm0, %v188_v0, 0.0  ;;  %v190_v8 = vmul.f32 %v174_v1, %v174_v1  ;;  %v655_v25 = vld [vmem:[%s990_s0 + $0xa] sm:$0x1] }
  0x18   :  { %v203_v33 = vrot.slane %v202_v2, 4  ;;  %v210_v36 = vrot.slane %v209_v34, 4  ;;  %v217_v37 = vrot.slane %v216_v6, 4  ;;  %v223_v38 = vsel %vm40_vm0, %v189_v4, 0.0 }
  0x19   :  { %v191_v9 = vmul.f32 %v175_v3, %v175_v3  ;;  %v224_v39 = vrot.slane %v223_v38, 4  ;;  %v230_v40 = vsel %vm40_vm0, %v190_v8, 0.0  ;;  %v176_v47 = vsub.f32 %v30_v31, %v160_v41 }
  0x1a   :  { %v204_v13 = vadd.f32 %v203_v33, %v202_v2  ;;  %v211_v42 = vadd.f32 %v210_v36, %v209_v34  ;;  %v218_v14 = vadd.f32 %v217_v37, %v216_v6  ;;  %v231_v18 = vrot.slane %v230_v40, 4 }
  0x1b   :  { %v237_v43 = vsel %vm40_vm0, %v191_v9, 0.0  ;;  %v225_v45 = vadd.f32 %v224_v39, %v223_v38  ;;  %v192_v55 = vmul.f32 %v176_v47, %v176_v47  ;;  %v161_v59 = vmul.f32 0.5, %v96_v51  ;;  %v694_v9 = vld [vmem:[%s990_s0 + $0xb] sm:$0x1]  ;;  %v703_v39 = vld [vmem:[%s990_s0 + $0xc] sm:$0x1] }
  0x1c   :  { %v205_v44 = vrot.slane %v204_v13, 2  ;;  %v238_v46 = vrot.slane %v237_v43, 4  ;;  %v212_v48 = vrot.slane %v211_v42, 2  ;;  %v219_v49 = vrot.slane %v218_v14, 2 }
  0x1d   :  { %v232_v50 = vadd.f32 %v231_v18, %v230_v40  ;;  %v226_v53 = vrot.slane %v225_v45, 2  ;;  %v244_v63 = vsel %vm40_vm0, %v192_v55, 0.0  ;;  %v177_v21 = vsub.f32 %v31_v35, %v161_v59 }
  0x1e   :  { %v206_v52 = vadd.f32 %v205_v44, %v204_v13  ;;  %v239_v54 = vadd.f32 %v238_v46, %v237_v43  ;;  %v213_v56 = vadd.f32 %v212_v48, %v211_v42  ;;  %v220_v57 = vadd.f32 %v219_v49, %v218_v14 }
  0x1f   :  { %v233_v58 = vrot.slane %v232_v50, 2  ;;  %v227_v61 = vadd.f32 %v226_v53, %v225_v45  ;;  %v245_v10 = vrot.slane %v244_v63, 4  ;;  %v193_v30 = vmul.f32 %v177_v21, %v177_v21 }
  0x20   :  { %v207_v60 = vrot.slane %v206_v52, 1  ;;  %v240_v62 = vrot.slane %v239_v54, 2  ;;  %v214_v7 = vrot.slane %v213_v56, 1  ;;  %v221_v22 = vrot.slane %v220_v57, 1 }
  0x21   :  { %v234_v31 = vadd.f32 %v233_v58, %v232_v50  ;;  %v228_v12 = vrot.slane %v227_v61, 1  ;;  %v246_v20 = vadd.f32 %v245_v10, %v244_v63  ;;  %v32_v0 = vunpack.c.l.bf16 %v645_v23  ;;  %v445_v58 = vld [vmem:[%s991_s1] sm:$0x1]  ;;  %v837_v23 = vld [vmem:[%s990_s0 + $0xe] sm:$0x1] }
  0x22   :  { %v632_v11 = vadd.f32 %v207_v60, %v206_v52  ;;  %v241_v15 = vadd.f32 %v240_v62, %v239_v54  ;;  %v634_v16 = vadd.f32 %v214_v7, %v213_v56  ;;  %v636_v17 = vadd.f32 %v221_v22, %v220_v57  ;;  %v448_v7 = vld [vmem:[%s991_s1 + $0x1] sm:$0x1] }
  0x23   :  { %v235_v19 = vrot.slane %v234_v31, 1  ;;  %v662_v35 = vadd.f32 %v228_v12, %v227_v61  ;;  %v247_v29 = vrot.slane %v246_v20, 2  ;;  %v33_v1 = vunpack.c.l.bf16 %v650_v24 }
  0x24   :  { %497 = vrsqrt.f32 %v632_v11  ;;  %vm316_vm1 = vcmp.eq.f32.partialorder %v632_v11, inf  ;;  %v319_v27 = vand.u32 2147483648, %v632_v11  ;;  %vm318_vm2 = vcmp.eq.f32.partialorder %v632_v11, 0.0 }
  0x25   :  { %499 = vrsqrt.f32 %v634_v16  ;;  %vm323_vm5 = vcmp.eq.f32.partialorder %v634_v16, inf  ;;  %v664_v26 = vadd.f32 %v235_v19, %v234_v31  ;;  %v242_v28 = vrot.slane %v241_v15, 1 }
  0x26   :  { %501 = vrsqrt.f32 %v636_v17  ;;  %v34_v32 = vunpack.c.l.bf16 %v655_v25  ;;  %vm325_vm6 = vcmp.eq.f32.partialorder %v634_v16, 0.0  ;;  %v326_v2 = vand.u32 2147483648, %v634_v16 }
  0x27   :  { %vm330_vm7 = vcmp.eq.f32.partialorder %v636_v17, inf  ;;  %503 = vrsqrt.f32 %v662_v35  ;;  %vm332_vm8 = vcmp.eq.f32.partialorder %v636_v17, 0.0  ;;  %v333_v4 = vand.u32 2147483648, %v636_v17 }
  0x28   :  { %v340_v3 = vand.u32 2147483648, %v662_v35  ;;  %505 = vrsqrt.f32 %v664_v26  ;;  %vm337_vm9 = vcmp.eq.f32.partialorder %v662_v35, inf  ;;  %v678_v5 = vadd.f32 %v242_v28, %v241_v15  ;;  %v451_v15 = vld [vmem:[%s991_s1 + $0x2] sm:$0x1] }
  0x29   :  { %v248_v33 = vadd.f32 %v247_v29, %v246_v20  ;;  %v251_v34 = vsel %vm40_vm0, %v193_v30, 0.0  ;;  %v97_v6 = vsel %vm40_vm0, %v32_v0, 0.0  ;;  %vm339_vm10 = vcmp.eq.f32.partialorder %v662_v35, 0.0 }
  0x2a   :  { %v252_v8 = vrot.slane %v251_v34, 4  ;;  %v98_v36 = vrot.slane %v97_v6, 4  ;;  %v104_v37 = vsel %vm40_vm0, %v33_v1, 0.0  ;;  %v111_v38 = vsel %vm40_vm0, %v34_v32, 0.0 }
  0x2b   :  { %vm344_vm11 = vcmp.eq.f32.partialorder %v664_v26, inf  ;;  %vm346_vm12 = vcmp.eq.f32.partialorder %v664_v26, 0.0  ;;  %v347_v13 = vand.u32 2147483648, %v664_v26  ;;  %507 = vrsqrt.f32 %v678_v5 }
  0x2c   :  { %v249_v41 = vrot.slane %v248_v33, 1  ;;  %v253_v42 = vadd.f32 %v252_v8, %v251_v34  ;;  %v99_v14 = vadd.f32 %v98_v36, %v97_v6  ;;  %v105_v18 = vrot.slane %v104_v37, 4  ;;  %v454_v34 = vld [vmem:[%s991_s1 + $0x3] sm:$0x1] }
  0x2d   :  { %vm351_vm13 = vcmp.eq.f32.partialorder %v678_v5, inf  ;;  %v354_v45 = vand.u32 2147483648, %v678_v5  ;;  %v112_v46 = vrot.slane %v111_v38, 4  ;;  %vm353_vm14 = vcmp.eq.f32.partialorder %v678_v5, 0.0 }
  0x2e   :  { %v498_v40 = vpop.eup %497  ;;  %v710_v49 = vadd.f32 %v249_v41, %v248_v33  ;;  %v35_v50 = vunpack.c.l.bf16 %v694_v9  ;;  %v36_v51 = vunpack.c.l.bf16 %v703_v39  ;;  %v254_v54 = vrot.slane %v253_v42, 2 }
  0x2f   :  { %v500_v43 = vpop.eup %499  ;;  %v315_v44 = vmul.f32 %v498_v40, %v632_v11  ;;  %v100_v55 = vrot.slane %v99_v14, 2  ;;  %v106_v60 = vadd.f32 %v105_v18, %v104_v37  ;;  %v113_v31 = vadd.f32 %v112_v46, %v111_v38 }
  0x30   :  { %v502_v47 = vpop.eup %501  ;;  %v322_v48 = vmul.f32 %v500_v43, %v634_v16  ;;  %509 = vrsqrt.f32 %v710_v49  ;;  %v118_v43 = vsel %vm40_vm0, %v35_v50, 0.0 }
  0x31   :  { %v317_v52 = vsel %vm316_vm1, %v632_v11, %v315_v44  ;;  %v329_v53 = vmul.f32 %v502_v47, %v636_v17  ;;  %v504_v61 = vpop.eup %503  ;;  %vm358_vm1 = vcmp.eq.f32.partialorder %v710_v49, inf  ;;  %v101_v29 = vadd.f32 %v100_v55, %v99_v14  ;;  %v460_v47 = vld [vmem:[%s991_s1 + $0x5] sm:$0x1] }
  0x32   :  { %v320_v56 = vsel %vm318_vm2, %v319_v27, %v317_v52  ;;  %v324_v59 = vsel %vm323_vm5, %v634_v16, %v322_v48  ;;  %v506_v10 = vpop.eup %505  ;;  %v336_v16 = vmul.f32 %v504_v61, %v662_v35  ;;  %v255_v27 = vadd.f32 %v254_v54, %v253_v42  ;;  %v810_v48 = vld [vmem:[%s990_s0 + $0xd] sm:$0x1] }
  0x33   :  { %v426_v62 = vpack.c.bf16 %v320_v56, %v320_v56  ;;  %v327_v63 = vsel %vm325_vm6, %v326_v2, %v324_v59  ;;  %v331_v22 = vsel %vm330_vm7, %v636_v17, %v329_v53  ;;  %v343_v21 = vmul.f32 %v506_v10, %v664_v26 }
  0x34   :  { %v427_v11 = vpack.c.bf16 %v327_v63, %v327_v63  ;;  %v334_v12 = vsel %vm332_vm8, %v333_v4, %v331_v22  ;;  %v338_v28 = vsel %vm337_vm9, %v662_v35, %v336_v16  ;;  %v107_v30 = vrot.slane %v106_v60, 2  ;;  %v457_v35 = vld [vmem:[%s991_s1 + $0x4] sm:$0x1] }
  0x35   :  { %v446_v19 = vsel %vm722_vm15, %v426_v62, %v445_v58  ;;  %v428_v20 = vpack.c.bf16 %v334_v12, %v334_v12  ;;  %v508_v2 = vpop.eup %507  ;;  %v341_v33 = vsel %vm339_vm10, %v340_v3, %v338_v28  ;;  %v345_v6 = vsel %vm344_vm11, %v664_v26, %v343_v21 }
  0x36   :  { %447 = vst [vmem:[%s991_s1] sm:$0x1] %v446_v19  ;;  %v449_v17 = vsel %vm722_vm15, %v427_v11, %v448_v7  ;;  %v256_v8 = vrot.slane %v255_v27, 1  ;;  %v429_v36 = vpack.c.bf16 %v341_v33, %v341_v33  ;;  %v348_v37 = vsel %vm346_vm12, %v347_v13, %v345_v6  ;;  %v463_v11 = vld [vmem:[%s991_s1 + $0x6] sm:$0x1] }
  0x37   :  { %450 = vst [vmem:[%s991_s1 + $0x1] sm:$0x1] %v449_v17  ;;  %v452_v4 = vsel %vm722_vm15, %v428_v20, %v451_v15  ;;  %v350_v3 = vmul.f32 %v508_v2, %v678_v5  ;;  %v102_v38 = vrot.slane %v101_v29, 1  ;;  %v430_v40 = vpack.c.bf16 %v348_v37, %v348_v37 }
  0x38   :  { %453 = vst [vmem:[%s991_s1 + $0x2] sm:$0x1] %v452_v4  ;;  %v783_v41 = vadd.f32 %v256_v8, %v255_v27  ;;  %v108_v42 = vadd.f32 %v107_v30, %v106_v60  ;;  %v114_v14 = vrot.slane %v113_v31, 2  ;;  %v455_v18 = vsel %vm722_vm15, %v429_v36, %v454_v34 }
  0x39   :  { %v352_v26 = vsel %vm351_vm13, %v678_v5, %v350_v3  ;;  %v103_v13 = vadd.f32 %v102_v38, %v101_v29  ;;  %456 = vst [vmem:[%s991_s1 + $0x3] sm:$0x1] %v455_v18  ;;  %v458_v44 = vsel %vm722_vm15, %v430_v40, %v457_v35  ;;  %vm360_vm2 = vcmp.eq.f32.partialorder %v710_v49, 0.0 }
  0x3a   :  { %v355_v46 = vsel %vm353_vm14, %v354_v45, %v352_v26  ;;  %511 = vrsqrt.f32 %v783_v41  ;;  %v510_v52 = vpop.eup %509  ;;  %459 = vst [vmem:[%s991_s1 + $0x4] sm:$0x1] %v458_v44  ;;  %v361_v45 = vand.u32 2147483648, %v710_v49  ;;  %v368_v53 = vand.u32 2147483648, %v783_v41 }
  0x3b   :  { %v431_v5 = vpack.c.bf16 %v355_v46, %v355_v46  ;;  %v162_v54 = vmul.f32 0.5, %v103_v13  ;;  %v357_v55 = vmul.f32 %v510_v52, %v710_v49  ;;  %vm365_vm3 = vcmp.eq.f32.partialorder %v783_v41, inf }
  0x3c   :  { %v109_v56 = vrot.slane %v108_v42, 1  ;;  %v115_v58 = vadd.f32 %v114_v14, %v113_v31  ;;  %v119_v59 = vrot.slane %v118_v43, 4  ;;  %vm367_vm4 = vcmp.eq.f32.partialorder %v783_v41, 0.0 }
  0x3d   :  { %v461_v60 = vsel %vm722_vm15, %v431_v5, %v460_v47  ;;  %v178_v61 = vsub.f32 %v32_v0, %v162_v54  ;;  %v125_v62 = vsel %vm40_vm0, %v36_v51, 0.0  ;;  %v37_v63 = vunpack.c.l.bf16 %v810_v48 }
  0x3e   :  { %462 = vst [vmem:[%s991_s1 + $0x5] sm:$0x1] %v461_v60  ;;  %v359_v7 = vsel %vm358_vm1, %v710_v49, %v357_v55  ;;  %v110_v22 = vadd.f32 %v109_v56, %v108_v42  ;;  %v116_v31 = vrot.slane %v115_v58, 1  ;;  %v120_v10 = vadd.f32 %v119_v59, %v118_v43 }
  0x3f   :  { %v362_v0 = vsel %vm360_vm2, %v361_v45, %v359_v7  ;;  %v194_v12 = vmul.f32 %v178_v61, %v178_v61  ;;  %v126_v15 = vrot.slane %v125_v62, 4  ;;  %v132_v16 = vsel %vm40_vm0, %v37_v63, 0.0 }
  0x40   :  { %v432_v19 = vpack.c.bf16 %v362_v0, %v362_v0  ;;  %v163_v20 = vmul.f32 0.5, %v110_v22  ;;  %v117_v21 = vadd.f32 %v116_v31, %v115_v58  ;;  %v121_v27 = vrot.slane %v120_v10, 2 }
  0x41   :  { %v258_v17 = vsel %vm40_vm0, %v194_v12, 0.0  ;;  %v127_v28 = vadd.f32 %v126_v15, %v125_v62  ;;  %v133_v29 = vrot.slane %v132_v16, 4  ;;  %v38_v49 = vunpack.c.l.bf16 %v837_v23 }
  0x42   :  { %v464_v30 = vsel %vm722_vm15, %v432_v19, %v463_v11  ;;  %v259_v2 = vrot.slane %v258_v17, 4  ;;  %v179_v4 = vsub.f32 %v33_v1, %v163_v20  ;;  %v164_v33 = vmul.f32 0.5, %v117_v21 }
  0x43   :  { %465 = vst [vmem:[%s991_s1 + $0x6] sm:$0x1] %v464_v30  ;;  %v122_v34 = vadd.f32 %v121_v27, %v120_v10  ;;  %v128_v6 = vrot.slane %v127_v28, 2  ;;  %v134_v8 = vadd.f32 %v133_v29, %v132_v16  ;;  %v139_v36 = vsel %vm40_vm0, %v38_v49, 0.0 }
  0x44   :  { %v512_v37 = vpop.eup %511  ;;  %v260_v35 = vadd.f32 %v259_v2, %v258_v17  ;;  %v195_v3 = vmul.f32 %v179_v4, %v179_v4  ;;  %v180_v38 = vsub.f32 %v34_v32, %v164_v33  ;;  %v140_v24 = vrot.slane %v139_v36, 4  ;;  %v466_v32 = vld [vmem:[%s991_s1 + $0x7] sm:$0x1] }
  0x45   :  { %v364_v1 = vmul.f32 %v512_v37, %v783_v41  ;;  %v123_v40 = vrot.slane %v122_v34, 1  ;;  %v129_v42 = vadd.f32 %v128_v6, %v127_v28  ;;  %v135_v14 = vrot.slane %v134_v8, 2 }
  0x46   :  { %v261_v18 = vrot.slane %v260_v35, 2  ;;  %v265_v26 = vsel %vm40_vm0, %v195_v3, 0.0  ;;  %v196_v13 = vmul.f32 %v180_v38, %v180_v38  ;;  %v141_v43 = vadd.f32 %v140_v24, %v139_v36 }
  0x47   :  { %v366_v44 = vsel %vm365_vm3, %v783_v41, %v364_v1  ;;  %v266_v46 = vrot.slane %v265_v26, 4  ;;  %v124_v47 = vadd.f32 %v123_v40, %v122_v34  ;;  %v130_v52 = vrot.slane %v129_v42, 1  ;;  %v875_v41 = vld [vmem:[%s990_s0 + $0xf] sm:$0x1] }
  0x48   :  { %v369_v25 = vsel %vm367_vm4, %v368_v53, %v366_v44  ;;  %v262_v5 = vadd.f32 %v261_v18, %v260_v35  ;;  %v272_v45 = vsel %vm40_vm0, %v196_v13, 0.0  ;;  %v136_v54 = vadd.f32 %v135_v14, %v134_v8 }
  0x49   :  { %v433_v55 = vpack.c.bf16 %v369_v25, %v369_v25  ;;  %v267_v56 = vadd.f32 %v266_v46, %v265_v26  ;;  %v273_v58 = vrot.slane %v272_v45, 4  ;;  %v165_v59 = vmul.f32 0.5, %v124_v47 }
  0x4a   :  { %v263_v60 = vrot.slane %v262_v5, 1  ;;  %v131_v61 = vadd.f32 %v130_v52, %v129_v42  ;;  %v137_v62 = vrot.slane %v136_v54, 1  ;;  %v142_v7 = vrot.slane %v141_v43, 2 }
  0x4b   :  { %v467_v53 = vsel %vm722_vm15, %v433_v55, %v466_v32  ;;  %v268_v22 = vrot.slane %v267_v56, 2  ;;  %v274_v31 = vadd.f32 %v273_v58, %v272_v45  ;;  %v181_v10 = vsub.f32 %v35_v50, %v165_v59 }
  0x4c   :  { %468 = vst [vmem:[%s991_s1 + $0x7] sm:$0x1] %v467_v53  ;;  %v264_v0 = vadd.f32 %v263_v60, %v262_v5  ;;  %v166_v11 = vmul.f32 0.5, %v131_v61  ;;  %v138_v12 = vadd.f32 %v137_v62, %v136_v54  ;;  %v143_v15 = vadd.f32 %v142_v7, %v141_v43  ;;  %v469_v54 = vld [vmem:[%s991_s1 + $0x8] sm:$0x1] }
  0x4d   :  { %v269_v16 = vadd.f32 %v268_v22, %v267_v56  ;;  %v275_v19 = vrot.slane %v274_v31, 2  ;;  %v197_v20 = vmul.f32 %v181_v10, %v181_v10  ;;  %v39_v21 = vunpack.c.l.bf16 %v875_v41 }
  0x4e   :  { %513 = vrsqrt.f32 %v264_v0  ;;  %v182_v9 = vsub.f32 %v36_v51, %v166_v11  ;;  %v167_v29 = vmul.f32 0.5, %v138_v12  ;;  %v144_v30 = vrot.slane %v143_v15, 1 }
  0x4f   :  { %v270_v27 = vrot.slane %v269_v16, 1  ;;  %v276_v17 = vadd.f32 %v275_v19, %v274_v31  ;;  %v279_v28 = vsel %vm40_vm0, %v197_v20, 0.0  ;;  %v146_v2 = vsel %vm40_vm0, %v39_v21, 0.0  ;;  %v472_v20 = vld [vmem:[%s991_s1 + $0x9] sm:$0x1] }
  0x50   :  { %v280_v50 = vrot.slane %v279_v28, 4  ;;  %v198_v34 = vmul.f32 %v182_v9, %v182_v9  ;;  %v147_v6 = vrot.slane %v146_v2, 4  ;;  %v183_v36 = vsub.f32 %v37_v63, %v167_v29 }
  0x51   :  { %v891_v4 = vadd.f32 %v270_v27, %v269_v16  ;;  %v277_v33 = vrot.slane %v276_v17, 1  ;;  %v145_v37 = vadd.f32 %v144_v30, %v143_v15  ;;  %vm372_vm5 = vcmp.eq.f32.partialorder %v264_v0, inf }
  0x52   :  { %v281_v8 = vadd.f32 %v280_v50, %v279_v28  ;;  %v286_v35 = vsel %vm40_vm0, %v198_v34, 0.0  ;;  %v199_v3 = vmul.f32 %v183_v36, %v183_v36  ;;  %v148_v1 = vadd.f32 %v147_v6, %v146_v2 }
  0x53   :  { %515 = vrsqrt.f32 %v891_v4  ;;  %v896_v39 = vadd.f32 %v277_v33, %v276_v17  ;;  %v287_v38 = vrot.slane %v286_v35, 4  ;;  %v168_v24 = vmul.f32 0.5, %v145_v37  ;;  %v475_v33 = vld [vmem:[%s991_s1 + $0xa] sm:$0x1] }
  0x54   :  { %v282_v51 = vrot.slane %v281_v8, 2  ;;  %v293_v48 = vsel %vm40_vm0, %v199_v3, 0.0  ;;  %vm374_vm6 = vcmp.eq.f32.partialorder %v264_v0, 0.0  ;;  %v375_v18 = vand.u32 2147483648, %v264_v0 }
  0x55   :  { %517 = vrsqrt.f32 %v896_v39  ;;  %v288_v42 = vadd.f32 %v287_v38, %v286_v35  ;;  %v184_v63 = vsub.f32 %v38_v49, %v168_v24  ;;  %v294_v26 = vrot.slane %v293_v48, 4 }
  0x56   :  { %v283_v40 = vadd.f32 %v282_v51, %v281_v8  ;;  %v149_v13 = vrot.slane %v148_v1, 2  ;;  %vm379_vm7 = vcmp.eq.f32.partialorder %v891_v4, inf  ;;  %vm381_vm8 = vcmp.eq.f32.partialorder %v891_v4, 0.0 }
  0x57   :  { %v289_v46 = vrot.slane %v288_v42, 2  ;;  %v200_v47 = vmul.f32 %v184_v63, %v184_v63  ;;  %v295_v52 = vadd.f32 %v294_v26, %v293_v48  ;;  %v382_v61 = vand.u32 2147483648, %v891_v4 }
  0x58   :  { %v514_v14 = vpop.eup %513  ;;  %v284_v44 = vrot.slane %v283_v40, 1  ;;  %v150_v25 = vadd.f32 %v149_v13, %v148_v1  ;;  %vm386_vm9 = vcmp.eq.f32.partialorder %v896_v39, inf  ;;  %vm388_vm10 = vcmp.eq.f32.partialorder %v896_v39, 0.0  ;;  %v478_v1 = vld [vmem:[%s991_s1 + $0xb] sm:$0x1] }
  0x59   :  { %v371_v43 = vmul.f32 %v514_v14, %v264_v0  ;;  %v290_v45 = vadd.f32 %v289_v46, %v288_v42  ;;  %v300_v23 = vsel %vm40_vm0, %v200_v47, 0.0  ;;  %v296_v55 = vrot.slane %v295_v52, 2 }
  0x5a   :  { %v285_v5 = vadd.f32 %v284_v44, %v283_v40  ;;  %v301_v56 = vrot.slane %v300_v23, 4  ;;  %v151_v58 = vrot.slane %v150_v25, 1  ;;  %v389_v12 = vand.u32 2147483648, %v896_v39 }
  0x5b   :  { %v373_v32 = vsel %vm372_vm5, %v264_v0, %v371_v43  ;;  %v291_v7 = vrot.slane %v290_v45, 1  ;;  %v297_v53 = vadd.f32 %v296_v55, %v295_v52  ;;  %v481_v52 = vld [vmem:[%s991_s1 + $0xc] sm:$0x1] }
  0x5c   :  { %v376_v49 = vsel %vm374_vm6, %v375_v18, %v373_v32  ;;  %519 = vrsqrt.f32 %v285_v5  ;;  %v302_v31 = vadd.f32 %v301_v56, %v300_v23  ;;  %v152_v10 = vadd.f32 %v151_v58, %v150_v25 }
  0x5d   :  { %v516_v59 = vpop.eup %515  ;;  %v434_v60 = vpack.c.bf16 %v376_v49, %v376_v49  ;;  %v292_v15 = vadd.f32 %v291_v7, %v290_v45  ;;  %v298_v16 = vrot.slane %v297_v53, 1  ;;  %vm393_vm11 = vcmp.eq.f32.partialorder %v285_v5, inf }
  0x5e   :  { %v378_v62 = vmul.f32 %v516_v59, %v891_v4  ;;  %v303_v17 = vrot.slane %v302_v31, 2  ;;  %v169_v28 = vmul.f32 0.5, %v152_v10  ;;  %v396_v51 = vand.u32 2147483648, %v285_v5 }
  0x5f   :  { %v470_v22 = vsel %vm722_vm15, %v434_v60, %v469_v54  ;;  %v518_v0 = vpop.eup %517  ;;  %521 = vrsqrt.f32 %v292_v15  ;;  %v299_v29 = vadd.f32 %v298_v16, %v297_v53  ;;  %vm395_vm12 = vcmp.eq.f32.partialorder %v285_v5, 0.0  ;;  %v484_v54 = vld [vmem:[%s991_s1 + $0xd] sm:$0x1]  ;;  %v487_v53 = vld [vmem:[%s991_s1 + $0xe] sm:$0x1] }
  0x60   :  { %471 = vst [vmem:[%s991_s1 + $0x8] sm:$0x1] %v470_v22  ;;  %v380_v11 = vsel %vm379_vm7, %v891_v4, %v378_v62  ;;  %v385_v27 = vmul.f32 %v518_v0, %v896_v39  ;;  %v304_v30 = vadd.f32 %v303_v17, %v302_v31  ;;  %v185_v34 = vsub.f32 %v39_v21, %v169_v28  ;;  %v490_v16 = vld [vmem:[%s991_s1 + $0xf] sm:$0x1] }
  0x61   :  { %v383_v19 = vsel %vm381_vm8, %v382_v61, %v380_v11  ;;  %523 = vrsqrt.f32 %v299_v29  ;;  %vm400_vm13 = vcmp.eq.f32.partialorder %v292_v15, inf  ;;  %v403_v63 = vand.u32 2147483648, %v292_v15 }
  0x62   :  { %v435_v9 = vpack.c.bf16 %v383_v19, %v383_v19  ;;  %v387_v50 = vsel %vm386_vm9, %v896_v39, %v385_v27  ;;  %v305_v8 = vrot.slane %v304_v30, 1  ;;  %v201_v36 = vmul.f32 %v185_v34, %v185_v34 }
  0x63   :  { %v390_v4 = vsel %vm388_vm10, %v389_v12, %v387_v50  ;;  %vm402_vm14 = vcmp.eq.f32.partialorder %v292_v15, 0.0  ;;  %v410_v44 = vand.u32 2147483648, %v299_v29  ;;  %vm409_vm1 = vcmp.eq.f32.partialorder %v299_v29, 0.0 }
  0x64   :  { %v473_v2 = vsel %vm722_vm15, %v435_v9, %v472_v20  ;;  %v436_v6 = vpack.c.bf16 %v390_v4, %v390_v4  ;;  %v306_v21 = vadd.f32 %v305_v8, %v304_v30  ;;  %v307_v35 = vsel %vm40_vm0, %v201_v36, 0.0 }
  0x65   :  { %474 = vst [vmem:[%s991_s1 + $0x9] sm:$0x1] %v473_v2  ;;  %v308_v3 = vrot.slane %v307_v35, 4  ;;  %vm407_vm0 = vcmp.eq.f32.partialorder %v299_v29, inf }
  0x66   :  { %v520_v37 = vpop.eup %519  ;;  %v476_v39 = vsel %vm722_vm15, %v436_v6, %v475_v33  ;;  %525 = vrsqrt.f32 %v306_v21  ;;  %vm414_vm2 = vcmp.eq.f32.partialorder %v306_v21, inf  ;;  %v417_v59 = vand.u32 2147483648, %v306_v21 }
  0x67   :  { %477 = vst [vmem:[%s991_s1 + $0xa] sm:$0x1] %v476_v39  ;;  %v392_v41 = vmul.f32 %v520_v37, %v285_v5  ;;  %v309_v40 = vadd.f32 %v308_v3, %v307_v35  ;;  %vm416_vm3 = vcmp.eq.f32.partialorder %v306_v21, 0.0 }
  0x69   :  { %v394_v38 = vsel %vm393_vm11, %v285_v5, %v392_v41  ;;  %v522_v42 = vpop.eup %521  ;;  %v310_v18 = vrot.slane %v309_v40, 2 }
  0x6a   :  { %v397_v24 = vsel %vm395_vm12, %v396_v51, %v394_v38  ;;  %v399_v14 = vmul.f32 %v522_v42, %v292_v15 }
  0x6b   :  { %v437_v48 = vpack.c.bf16 %v397_v24, %v397_v24  ;;  %v524_v13 = vpop.eup %523  ;;  %v311_v46 = vadd.f32 %v310_v18, %v309_v40 }
  0x6c   :  { %v401_v43 = vsel %vm400_vm13, %v292_v15, %v399_v14  ;;  %v406_v25 = vmul.f32 %v524_v13, %v299_v29 }
  0x6d   :  { %v479_v26 = vsel %vm722_vm15, %v437_v48, %v478_v1  ;;  %v404_v47 = vsel %vm402_vm14, %v403_v63, %v401_v43  ;;  %v312_v5 = vrot.slane %v311_v46, 1 }
  0x6e   :  { %480 = vst [vmem:[%s991_s1 + $0xb] sm:$0x1] %v479_v26  ;;  %v438_v32 = vpack.c.bf16 %v404_v47, %v404_v47  ;;  %v408_v45 = vsel %vm407_vm0, %v299_v29, %v406_v25 }
  0x6f   :  { %v411_v49 = vsel %vm409_vm1, %v410_v44, %v408_v45  ;;  %v313_v55 = vadd.f32 %v312_v5, %v311_v46 }
  0x70   :  { %v482_v23 = vsel %vm722_vm15, %v438_v32, %v481_v52  ;;  %v526_v56 = vpop.eup %525  ;;  %v439_v58 = vpack.c.bf16 %v411_v49, %v411_v49 }
  0x71   :  { %483 = vst [vmem:[%s991_s1 + $0xc] sm:$0x1] %v482_v23  ;;  %v413_v60 = vmul.f32 %v526_v56, %v306_v21  ;;  %527 = vrsqrt.f32 %v313_v55  ;;  %vm421_vm4 = vcmp.eq.f32.partialorder %v313_v55, inf  ;;  %v424_v0 = vand.u32 2147483648, %v313_v55 }
  0x72   :  { %v485_v61 = vsel %vm722_vm15, %v439_v58, %v484_v54  ;;  %vm423_vm5 = vcmp.eq.f32.partialorder %v313_v55, 0.0 }
  0x73   :  { %486 = vst [vmem:[%s991_s1 + $0xd] sm:$0x1] %v485_v61  ;;  %v415_v62 = vsel %vm414_vm2, %v306_v21, %v413_v60 }
  0x74   :  { %v418_v7 = vsel %vm416_vm3, %v417_v59, %v415_v62 }
  0x75   :  { %v440_v22 = vpack.c.bf16 %v418_v7, %v418_v7 }
  0x77   :  { %v488_v31 = vsel %vm722_vm15, %v440_v22, %v487_v53 }
  0x78   :  { %489 = vst [vmem:[%s991_s1 + $0xe] sm:$0x1] %v488_v31 }
  0x7b   :  { %v528_v10 = vpop.eup %527 }
  0x7c   :  { %v420_v11 = vmul.f32 %v528_v10, %v313_v55 }
  0x7e   :  { %v422_v12 = vsel %vm421_vm4, %v313_v55, %v420_v11 }
  0x7f   :  { %v425_v15 = vsel %vm423_vm5, %v424_v0, %v422_v12 }
  0x80   :  { %v441_v19 = vpack.c.bf16 %v425_v15, %v425_v15 }
  0x82   :  { %v491_v20 = vsel %vm722_vm15, %v441_v19, %v490_v16 }
  0x83   :  { %492 = vst [vmem:[%s991_s1 + $0xf] sm:$0x1] %v491_v20 }

// kernel: projected_subdiscriminator.11
= control target key start
LH: loop header
LB: loop body
LE: loop exit
PB: predicated region body
PF: predicated region fallthrough
CT: control target
= control target key end

     0   :  { %s1948_s0 = inlined_call_operand.vmem [shape: bf16[64,384], index: 0, kind: input, shape index: {}]   ;;  %s1949_s1 = inlined_call_operand.vmem [shape: f32[64,1], index: 1, kind: input, shape index: {}]   ;;  %s1950_s2 = inlined_call_operand.vmem [shape: bf16[288,8], index: 2, kind: input, shape index: {}]   ;;  %s1951_s3 = inlined_call_operand.<no memory space> [shape: bf16[], index: 3, kind: input, shape index: {}]   ;;  %s1952_s4 = inlined_call_operand.vmem [shape: bf16[64,128], index: 4, kind: output, shape index: {}]  }
   0x1   :  { %v9_v0 = vstv %s1951_s3 }
   0x2   :  { %v1667_v1 = vunpack.i.l.bf16 %v9_v0 }
   0x3   :  { %v32_v2 = vlaneseq  ;;  %v1392_v3 = vld [vmem:[%s1950_s2 + $0x40] sm:$0xff]   ;;  %v1394_v5 = vld [vmem:[%s1950_s2 + $0x48] sm:$0xff]   ;;  %v1396_v13 = vld [vmem:[%s1950_s2 + $0x50] sm:$0xff]   ;;  %v1637_v14 = vmov 0   ;;  %v1638_v31 = vmov 0.0  }
   0x4   :  { %v29_v4 = vld [vmem:[%s1950_s2] sm:$0xff]   ;;  %v1467_v6 = vpack.c.bf16 %v1667_v1, %v1667_v1  ;;  %v381_v7 = vunpack.c.l.bf16 %v1392_v3  ;;  %v403_v8 = vunpack.c.h.bf16 %v1392_v3  ;;  %v1378_v12 = vld [vmem:[%s1950_s2 + $0x8] sm:$0xff]   ;;  %1595 = vset.pattern.permute.xlu0 %v1637_v14  ;;  %1596 = vset.pattern.permute.xlu1 %v1637_v14  ;;  %v425_v16 = vunpack.c.l.bf16 %v1394_v5  ;;  %v1380_v36 = vld [vmem:[%s1950_s2 + $0x10] sm:$0xff]  }
   0x5   :  { %v30_v9 = vunpack.c.l.bf16 %v29_v4  ;;  %v51_v10 = vunpack.c.h.bf16 %v29_v4  ;;  %v1408_v11 = vld [vmem:[%s1950_s2 + $0x80] sm:$0xff]   ;;  %v1689_v15 = vand.u32 127, %v32_v2  ;;  %v447_v17 = vunpack.c.h.bf16 %v1394_v5  ;;  %v1410_v19 = vld [vmem:[%s1950_s2 + $0x88] sm:$0xff]   ;;  %v1398_v51 = vld [vmem:[%s1950_s2 + $0x58] sm:$0xff]  }
   0x6   :  { %v733_v18 = vunpack.c.l.bf16 %v1408_v11  ;;  %1468 = vst [vmem:[#allocation7 + $0x90] sm:$0xff] %v1467_v6   ;;  %1473 = vst [vmem:[#allocation7 + $0x98] sm:$0xff] %v1467_v6   ;;  %v755_v20 = vunpack.c.h.bf16 %v1408_v11  ;;  %v73_v21 = vunpack.c.l.bf16 %v1378_v12  ;;  %v95_v22 = vunpack.c.h.bf16 %v1378_v12  ;;  %v1622_v41 = vld [vmem:[%s1948_s0 + $0x4] ss:$12 sps:$4 sm:$0xff]   ;;  %v1624_v46 = vld [vmem:[%s1948_s0 + $0x8] ss:$12 sps:$4 sm:$0xff]  }
   0x7   :  { %1478 = vst [vmem:[#allocation7 + $0xa0] sm:$0xff] %v1467_v6   ;;  %1483 = vst [vmem:[#allocation7 + $0xa8] sm:$0xff] %v1467_v6   ;;  %v469_v23 = vunpack.c.l.bf16 %v1396_v13  ;;  %vm35_vm0 = vcmp.lt.s32.totalorder %v1689_v15, 8  ;;  %v491_v24 = vunpack.c.h.bf16 %v1396_v13  ;;  %v777_v25 = vunpack.c.l.bf16 %v1410_v19  ;;  %1211 = vmatprep.mubr.bf16.mxu0 %v1622_v41  ;;  %v1382_v56 = vld [vmem:[%s1950_s2 + $0x18] sm:$0xff]   ;;  %1585 = vmatprep.mubr.bf16.mxu1 %v1624_v46  ;;  %v1400_v61 = vld [vmem:[%s1950_s2 + $0x60] sm:$0xff]  }
   0x8   :  { %1488 = vst [vmem:[#allocation7 + $0xb0] sm:$0xff] %v1467_v6   ;;  %1493 = vst [vmem:[#allocation7 + $0xb8] sm:$0xff] %v1467_v6   ;;  %v799_v26 = vunpack.c.h.bf16 %v1410_v19  ;;  %v387_v27 = vsel %vm35_vm0, %v381_v7, %v1667_v1  ;;  %v409_v28 = vsel %vm35_vm0, %v403_v8, %v1667_v1  ;;  %v36_v29 = vsel %vm35_vm0, %v30_v9, %v1667_v1  ;;  %v1384_v3 = vld [vmem:[%s1950_s2 + $0x20] sm:$0xff]   ;;  %v1402_v8 = vld [vmem:[%s1950_s2 + $0x68] sm:$0xff]  }
   0x9   :  { %v57_v30 = vsel %vm35_vm0, %v51_v10, %v1667_v1  ;;  %v389_v32 = vpack.c.bf16 %v1638_v31, %v387_v27  ;;  %v411_v33 = vpack.c.bf16 %v1638_v31, %v409_v28  ;;  %v37_v34 = vpack.c.bf16 %v1638_v31, %v36_v29  ;;  %v1386_v13 = vld [vmem:[%s1950_s2 + $0x28] sm:$0xff]  }
   0xa   :  { %v59_v35 = vpack.c.bf16 %v1638_v31, %v57_v30  ;;  %v431_v37 = vsel %vm35_vm0, %v425_v16, %v1667_v1  ;;  %v453_v38 = vsel %vm35_vm0, %v447_v17, %v1667_v1  ;;  %v739_v39 = vsel %vm35_vm0, %v733_v18, %v1667_v1  ;;  %v1404_v30 = vld [vmem:[%s1950_s2 + $0x70] sm:$0xff]  }
   0xb   :  { %v761_v40 = vsel %vm35_vm0, %v755_v20, %v1667_v1  ;;  %391 = vst [vmem:[#allocation7 + $0x40] sm:$0xf] %v389_v32  ;;  %413 = vst [vmem:[#allocation7 + $0x44] sm:$0xf] %v411_v33  ;;  %v433_v42 = vpack.c.bf16 %v1638_v31, %v431_v37  ;;  %v455_v43 = vpack.c.bf16 %v1638_v31, %v453_v38  ;;  %v117_v59 = vunpack.c.l.bf16 %v1380_v36  ;;  %v1388_v37 = vld [vmem:[%s1950_s2 + $0x30] sm:$0xff]   ;;  %v1817_v38 = vld [vmem:[%s1950_s2 + $0x78] sm:$0xff]  }
   0xc   :  { %39 = vst [vmem:[#allocation7] sm:$0xf] %v37_v34  ;;  %61 = vst [vmem:[#allocation7 + $0x4] sm:$0xf] %v59_v35  ;;  %v741_v44 = vpack.c.bf16 %v1638_v31, %v739_v39  ;;  %v763_v45 = vpack.c.bf16 %v1638_v31, %v761_v40  ;;  %v79_v47 = vsel %vm35_vm0, %v73_v21, %v1667_v1  ;;  %v139_v60 = vunpack.c.h.bf16 %v1380_v36 }
   0xd   :  { %v101_v48 = vsel %vm35_vm0, %v95_v22, %v1667_v1  ;;  %v475_v49 = vsel %vm35_vm0, %v469_v23, %v1667_v1  ;;  %v497_v50 = vsel %vm35_vm0, %v491_v24, %v1667_v1  ;;  %435 = vst [vmem:[#allocation7 + $0x48] sm:$0xf] %v433_v42  ;;  %457 = vst [vmem:[#allocation7 + $0x4c] sm:$0xf] %v455_v43  ;;  %v513_v0 = vunpack.c.l.bf16 %v1398_v51 }
   0xe   :  { %743 = vst [vmem:[#allocation7 + $0x80] sm:$0xf] %v741_v44  ;;  %765 = vst [vmem:[#allocation7 + $0x84] sm:$0xf] %v763_v45  ;;  %v81_v52 = vpack.c.bf16 %v1638_v31, %v79_v47  ;;  %v103_v53 = vpack.c.bf16 %v1638_v31, %v101_v48  ;;  %v477_v54 = vpack.c.bf16 %v1638_v31, %v475_v49  ;;  %v535_v2 = vunpack.c.h.bf16 %v1398_v51  ;;  %v1390_v44 = vld [vmem:[%s1950_s2 + $0x38] sm:$0xff]   ;;  %v1615_v15 = vld [vmem:[#allocation7 + $0xa8] sm:$0xff]  }
   0xf   :  { %v499_v55 = vpack.c.bf16 %v1638_v31, %v497_v50  ;;  %v783_v57 = vsel %vm35_vm0, %v777_v25, %v1667_v1  ;;  %v805_v58 = vsel %vm35_vm0, %v799_v26, %v1667_v1  ;;  %v123_v4 = vsel %vm35_vm0, %v117_v59, %v1667_v1 }
  0x10   :  { %83 = vst [vmem:[#allocation7 + $0x8] sm:$0xf] %v81_v52  ;;  %105 = vst [vmem:[#allocation7 + $0xc] sm:$0xf] %v103_v53  ;;  %v785_v62 = vpack.c.bf16 %v1638_v31, %v783_v57  ;;  %v807_v63 = vpack.c.bf16 %v1638_v31, %v805_v58  ;;  %v145_v5 = vsel %vm35_vm0, %v139_v60, %v1667_v1  ;;  %v161_v6 = vunpack.c.l.bf16 %v1382_v56 }
  0x11   :  { %479 = vst [vmem:[#allocation7 + $0x50] sm:$0xf] %v477_v54  ;;  %501 = vst [vmem:[#allocation7 + $0x54] sm:$0xf] %v499_v55  ;;  %v183_v7 = vunpack.c.h.bf16 %v1382_v56  ;;  %v125_v9 = vpack.c.bf16 %v1638_v31, %v123_v4  ;;  %v147_v10 = vpack.c.bf16 %v1638_v31, %v145_v5  ;;  %v519_v11 = vsel %vm35_vm0, %v513_v0, %v1667_v1  ;;  %v1606_v55 = vld [vmem:[#allocation7 + $0x90] sm:$0xff]  }
  0x12   :  { %787 = vst [vmem:[#allocation7 + $0x88] sm:$0xf] %v785_v62  ;;  %809 = vst [vmem:[#allocation7 + $0x8c] sm:$0xf] %v807_v63  ;;  %v541_v12 = vsel %vm35_vm0, %v535_v2, %v1667_v1  ;;  %v1597_v14 = vld [vmem:[#allocation7 + $0x40] sm:$0xff]   ;;  %v521_v16 = vpack.c.bf16 %v1638_v31, %v519_v11  ;;  %v167_v18 = vsel %vm35_vm0, %v161_v6, %v1667_v1  ;;  %v557_v23 = vunpack.c.l.bf16 %v1400_v61 }
  0x13   :  { %v543_v17 = vpack.c.bf16 %v1638_v31, %v541_v12  ;;  %v189_v19 = vsel %vm35_vm0, %v183_v7, %v1667_v1  ;;  %v1598_v20 = vld [vmem:[#allocation7] sm:$0xff]   ;;  %127 = vst [vmem:[#allocation7 + $0x10] sm:$0xf] %v125_v9  ;;  %149 = vst [vmem:[#allocation7 + $0x14] sm:$0xf] %v147_v10  ;;  %v169_v21 = vpack.c.bf16 %v1638_v31, %v167_v18  ;;  %v579_v24 = vunpack.c.h.bf16 %v1400_v61  ;;  %v1609_v12 = vld [vmem:[#allocation7 + $0x98] sm:$0xff]  }
  0x14   :  { %v191_v22 = vpack.c.bf16 %v1638_v31, %v189_v19  ;;  %1517 = vmatprep.subr.bf16.mxu0 %v1597_v14  ;;  %v1599_v25 = vld [vmem:[#allocation7 + $0x48] sm:$0xff]   ;;  %523 = vst [vmem:[#allocation7 + $0x58] sm:$0xf] %v521_v16  ;;  %v205_v26 = vunpack.c.l.bf16 %v1384_v3  ;;  %v227_v27 = vunpack.c.h.bf16 %v1384_v3  ;;  %v601_v28 = vunpack.c.l.bf16 %v1402_v8 }
  0x15   :  { %545 = vst [vmem:[#allocation7 + $0x5c] sm:$0xf] %v543_v17  ;;  %v623_v29 = vunpack.c.h.bf16 %v1402_v8  ;;  %1518 = vmatpush3.bf16.msra.mxu0 %v1598_v20  ;;  %v1600_v32 = vld [vmem:[#allocation7 + $0x80] sm:$0xff]   ;;  %171 = vst [vmem:[#allocation7 + $0x18] sm:$0xf] %v169_v21  ;;  %v563_v33 = vsel %vm35_vm0, %v557_v23, %v1667_v1  ;;  %v585_v34 = vsel %vm35_vm0, %v579_v24, %v1667_v1  ;;  %v249_v35 = vunpack.c.l.bf16 %v1386_v13 }
  0x16   :  { %193 = vst [vmem:[#allocation7 + $0x1c] sm:$0xf] %v191_v22  ;;  %v271_v36 = vunpack.c.h.bf16 %v1386_v13  ;;  %1519 = vmatprep.subr.bf16.mxu0 %v1599_v25  ;;  %v565_v40 = vpack.c.bf16 %v1638_v31, %v563_v33  ;;  %v587_v41 = vpack.c.bf16 %v1638_v31, %v585_v34  ;;  %v211_v42 = vsel %vm35_vm0, %v205_v26, %v1667_v1  ;;  %v1612_v25 = vld [vmem:[#allocation7 + $0xa0] sm:$0xff]   ;;  %v925_v33 = vld [vmem:[%s1949_s1 + $0x10] sm:$0xff]  ;;  %v924_v34 = vld [vmem:[%s1949_s1 + $0x8] sm:$0xff] }
  0x17   :  { %v1601_v39 = vld [vmem:[#allocation7 + $0x8] sm:$0xff]   ;;  %v233_v43 = vsel %vm35_vm0, %v227_v27, %v1667_v1  ;;  %1569 = vmatprep.subr.bf16.mxu1 %v1600_v32  ;;  %v213_v46 = vpack.c.bf16 %v1638_v31, %v211_v42  ;;  %v607_v48 = vsel %vm35_vm0, %v601_v28, %v1667_v1  ;;  %v629_v49 = vsel %vm35_vm0, %v623_v29, %v1667_v1  ;;  %v1618_v29 = vld [vmem:[#allocation7 + $0xb0] sm:$0xff]  }
  0x18   :  { %v1602_v45 = vld [vmem:[#allocation7 + $0x50] sm:$0xff]   ;;  %v235_v47 = vpack.c.bf16 %v1638_v31, %v233_v43  ;;  %1570 = vmatpush3.bf16.msra.mxu1 %v1600_v32  ;;  %567 = vst [vmem:[#allocation7 + $0x60] sm:$0xf] %v565_v40  ;;  %589 = vst [vmem:[#allocation7 + $0x64] sm:$0xf] %v587_v41  ;;  %v609_v51 = vpack.c.bf16 %v1638_v31, %v607_v48  ;;  %v631_v52 = vpack.c.bf16 %v1638_v31, %v629_v49  ;;  %v923_v32 = vld [vmem:[%s1949_s1] sm:$0xff] }
  0x19   :  { %v1603_v50 = vld [vmem:[#allocation7 + $0x88] sm:$0xff]   ;;  %v255_v53 = vsel %vm35_vm0, %v249_v35, %v1667_v1  ;;  %v277_v54 = vsel %vm35_vm0, %v271_v36, %v1667_v1  ;;  %1520 = vmatpush3.bf16.msra.mxu0 %v1601_v39  ;;  %215 = vst [vmem:[#allocation7 + $0x20] sm:$0xf] %v213_v46  ;;  %v645_v58 = vunpack.c.l.bf16 %v1404_v30  ;;  %v667_v59 = vunpack.c.h.bf16 %v1404_v30  ;;  %933 = vperm.xlu0 %1595, %v923_v32   ;;  %v926_v35 = vld [vmem:[%s1949_s1 + $0x18] sm:$0xff]  ;;  %v927_v40 = vld [vmem:[%s1949_s1 + $0x20] sm:$0xff] }
  0x1a   :  { %237 = vst [vmem:[#allocation7 + $0x24] sm:$0xf] %v235_v47  ;;  %v257_v56 = vpack.c.bf16 %v1638_v31, %v255_v53  ;;  %v279_v57 = vpack.c.bf16 %v1638_v31, %v277_v54  ;;  %1521 = vmatprep.subr.bf16.mxu0 %v1602_v45  ;;  %1571 = vmatprep.subr.bf16.mxu1 %v1603_v50  ;;  %v1604_v60 = vld [vmem:[#allocation7 + $0x10] sm:$0xff]   ;;  %611 = vst [vmem:[#allocation7 + $0x68] sm:$0xf] %v609_v51  ;;  %v293_v61 = vunpack.c.l.bf16 %v1388_v37  ;;  %v928_v39 = vld [vmem:[%s1949_s1 + $0x28] sm:$0xff] }
  0x1b   :  { %633 = vst [vmem:[#allocation7 + $0x6c] sm:$0xf] %v631_v52  ;;  %v315_v62 = vunpack.c.h.bf16 %v1388_v37  ;;  %v689_v63 = vunpack.c.l.bf16 %v1817_v38  ;;  %v711_v0 = vunpack.c.h.bf16 %v1817_v38  ;;  %v651_v3 = vsel %vm35_vm0, %v645_v58, %v1667_v1  ;;  %943 = vperm.xlu1 %1596, %v925_v33   ;;  %v1623_v37 = vld [vmem:[#allocation7 + $0xb8] sm:$0xff]   ;;  %v1620_v38 = vld [vmem:[%s1948_s0] ss:$12 sps:$4 sm:$0xff]   ;;  %v929_v45 = vld [vmem:[%s1949_s1 + $0x30] sm:$0xff] }
  0x1c   :  { %v1605_v2 = vld [vmem:[#allocation7 + $0x58] sm:$0xff]   ;;  %259 = vst [vmem:[#allocation7 + $0x28] sm:$0xf] %v257_v56  ;;  %281 = vst [vmem:[#allocation7 + $0x2c] sm:$0xf] %v279_v57  ;;  %v673_v4 = vsel %vm35_vm0, %v667_v59, %v1667_v1  ;;  %v337_v5 = vunpack.c.l.bf16 %v1390_v44  ;;  %v359_v6 = vunpack.c.h.bf16 %v1390_v44  ;;  %1572 = vmatpush3.bf16.msra.mxu1 %v1603_v50  ;;  %v653_v7 = vpack.c.bf16 %v1638_v31, %v651_v3 }
  0x1d   :  { %v675_v8 = vpack.c.bf16 %v1638_v31, %v673_v4  ;;  %v299_v9 = vsel %vm35_vm0, %v293_v61, %v1667_v1  ;;  %v321_v10 = vsel %vm35_vm0, %v315_v62, %v1667_v1  ;;  %1522 = vmatpush3.bf16.msra.mxu0 %v1604_v60  ;;  %1573 = vmatprep.subr.bf16.mxu1 %v1606_v55  ;;  %v1607_v11 = vld [vmem:[#allocation7 + $0x18] sm:$0xff]   ;;  %v1625_v42 = vld [vmem:[%s1948_s0 + $0x20] ss:$12 sps:$4 sm:$0xff]   ;;  %v1636_v51 = vld [vmem:[%s1948_s0 + $0x48] ss:$12 sps:$4 sm:$0xff]  }
  0x1e   :  { %v301_v13 = vpack.c.bf16 %v1638_v31, %v299_v9  ;;  %v323_v14 = vpack.c.bf16 %v1638_v31, %v321_v10  ;;  %v695_v16 = vsel %vm35_vm0, %v689_v63, %v1667_v1  ;;  %1523 = vmatprep.subr.bf16.mxu0 %v1605_v2  ;;  %655 = vst [vmem:[#allocation7 + $0x70] sm:$0xf] %v653_v7  ;;  %v1626_v41 = vld [vmem:[%s1948_s0 + $0x1c] ss:$12 sps:$4 sm:$0xff]   ;;  %v1632_v43 = vld [vmem:[%s1948_s0 + $0x38] ss:$12 sps:$4 sm:$0xff]  }
  0x1f   :  { %677 = vst [vmem:[#allocation7 + $0x74] sm:$0xf] %v675_v8  ;;  %v697_v17 = vpack.c.bf16 %v1638_v31, %v695_v16  ;;  %v717_v18 = vsel %vm35_vm0, %v711_v0, %v1667_v1  ;;  %v343_v19 = vsel %vm35_vm0, %v337_v5, %v1667_v1  ;;  %v365_v20 = vsel %vm35_vm0, %v359_v6, %v1667_v1  ;;  %v1608_v21 = vld [vmem:[#allocation7 + $0x60] sm:$0xff]   ;;  %v930_v44 = vld [vmem:[%s1949_s1 + $0x38] sm:$0xff] }
  0x20   :  { %303 = vst [vmem:[#allocation7 + $0x30] sm:$0xf] %v301_v13  ;;  %325 = vst [vmem:[#allocation7 + $0x34] sm:$0xf] %v323_v14  ;;  %v719_v22 = vpack.c.bf16 %v1638_v31, %v717_v18  ;;  %v345_v23 = vpack.c.bf16 %v1638_v31, %v343_v19  ;;  %v367_v24 = vpack.c.bf16 %v1638_v31, %v365_v20  ;;  %1574 = vmatpush3.bf16.msra.mxu1 %v1606_v55  ;;  %v1628_v46 = vld [vmem:[%s1948_s0 + $0x18] ss:$12 sps:$4 sm:$0xff]  }
  0x21   :  { %699 = vst [vmem:[#allocation7 + $0x78] sm:$0xf] %v697_v17  ;;  %1524 = vmatpush3.bf16.msra.mxu0 %v1607_v11  ;;  %1575 = vmatprep.subr.bf16.mxu1 %v1609_v12  ;;  %v1610_v26 = vld [vmem:[#allocation7 + $0x20] sm:$0xff]   ;;  %v1633_v48 = vld [vmem:[%s1948_s0 + $0x50] ss:$12 sps:$4 sm:$0xff]  }
  0x22   :  { %721 = vst [vmem:[#allocation7 + $0x7c] sm:$0xf] %v719_v22  ;;  %347 = vst [vmem:[#allocation7 + $0x38] sm:$0xf] %v345_v23  ;;  %1525 = vmatprep.subr.bf16.mxu0 %v1608_v21  ;;  %v1611_v1 = vld [vmem:[#allocation7 + $0x68] sm:$0xff]   ;;  %938 = vperm.xlu0 %1595, %v924_v34  }
  0x23   :  { %369 = vst [vmem:[#allocation7 + $0x3c] sm:$0xf] %v367_v24  ;;  %v1613_v27 = vld [vmem:[#allocation7 + $0x28] sm:$0xff]   ;;  %948 = vperm.xlu1 %1596, %v926_v35   ;;  %v1629_v47 = vld [vmem:[%s1948_s0 + $0x34] ss:$12 sps:$4 sm:$0xff]  }
  0x24   :  { %1576 = vmatpush3.bf16.msra.mxu1 %v1609_v12  ;;  %v1631_v49 = vld [vmem:[%s1948_s0 + $0x30] ss:$12 sps:$4 sm:$0xff]   ;;  %v1634_v50 = vld [vmem:[%s1948_s0 + $0x4c] ss:$12 sps:$4 sm:$0xff]  }
  0x25   :  { %1526 = vmatpush3.bf16.msra.mxu0 %v1610_v26  ;;  %1577 = vmatprep.subr.bf16.mxu1 %v1612_v25 }
  0x26   :  { %1527 = vmatprep.subr.bf16.mxu0 %v1611_v1  ;;  %v1614_v28 = vld [vmem:[#allocation7 + $0x70] sm:$0xff]   ;;  %953 = vperm.xlu0 %1595, %v927_v40  }
  0x27   :  { %v1616_v31 = vld [vmem:[#allocation7 + $0x30] sm:$0xff]   ;;  %958 = vperm.xlu1 %1596, %v928_v39  }
  0x28   :  { %1578 = vmatpush3.bf16.msra.mxu1 %v1612_v25 }
  0x29   :  { %1528 = vmatpush3.bf16.msra.mxu0 %v1613_v27  ;;  %1579 = vmatprep.subr.bf16.mxu1 %v1615_v15  ;;  %v1617_v30 = vld [vmem:[#allocation7 + $0x78] sm:$0xff]  }
  0x2a   :  { %1529 = vmatprep.subr.bf16.mxu0 %v1614_v28  ;;  %v1619_v36 = vld [vmem:[#allocation7 + $0x38] sm:$0xff]   ;;  %963 = vperm.xlu0 %1595, %v929_v45  }
  0x2b   :  { %968 = vperm.xlu1 %1596, %v930_v44  }
  0x2c   :  { %1580 = vmatpush3.bf16.msra.mxu1 %v1615_v15 }
  0x2d   :  { %1530 = vmatpush3.bf16.msra.mxu0 %v1616_v31  ;;  %1581 = vmatprep.subr.bf16.mxu1 %v1618_v29 }
  0x2e   :  { %1531 = vmatprep.subr.bf16.mxu0 %v1617_v30 }
  0x30   :  { %1582 = vmatpush3.bf16.msra.mxu1 %v1618_v29 }
  0x31   :  { %1532 = vmatpush3.bf16.msra.mxu0 %v1619_v36  ;;  %1583 = vmatprep.subr.bf16.mxu1 %v1623_v37 }
  0x34   :  { %1212 = vmatmul.mubr.bf16.vlgmr.msra.gmra.mrb[0].mxu0 %v1620_v38  ;;  %1584 = vmatpush3.bf16.msra.mxu1 %v1623_v37 }
  0x35   :  { %1219 = vmatprep.mubr.bf16.mxu0 %v1626_v41 }
  0x37   :  { %1586 = vmatmul.mubr.bf16.vlgmr.msra.gmra.mrb[0].mxu1 %v1625_v42 }
  0x38   :  { %1589 = vmatprep.mubr.bf16.mxu1 %v1632_v43 }
  0x3c   :  { %1220 = vmatmul.mubr.bf16.gmra.mrb[4].mxu0 %v1628_v46 }
  0x3d   :  { %1227 = vmatprep.mubr.bf16.mxu0 %v1629_v47 }
  0x3f   :  { %1590 = vmatmul.mubr.bf16.gmra.mrb[4].mxu1 %v1633_v48 }
  0x44   :  { %1228 = vmatmul.mubr.bf16.gmra.mrb[8].mxu0 %v1631_v49 }
  0x45   :  { %1235 = vmatprep.mubr.bf16.mxu0 %v1634_v50 }
  0x4c   :  { %1236 = vmatmul.mubr.bf16.gmra.mrb[12].mxu0 %v1636_v51 }
  0x98   :  { %v934_v52 = vpop.permute.xlu0 %933 }
  0x9a   :  { %v944_v4 = vpop.permute.xlu1 %943 }
  0xa1   :  { %v939_v57 = vpop.permute.xlu0 %938 }
  0xa2   :  { %v949_v21 = vpop.permute.xlu1 %948 }
  0xa5   :  { %v954_v30 = vpop.permute.xlu0 %953 }
  0xa6   :  { %v959_v38 = vpop.permute.xlu1 %958 }
  0xa9   :  { %v964_v48 = vpop.permute.xlu0 %963 }
 0x107   :  { %v1533_v53 = vpop.f32.mrb[0].mxu0 }
 0x108   :  { %v1534_v54 = vpop.f32.mrb[1].mxu0 }
 0x109   :  { %v1535_v55 = vadd.f32 %v1534_v54, %v1533_v53  ;;  %v1536_v56 = vpop.f32.mrb[2].mxu0  ;;  %v969_v54 = vpop.permute.xlu1 %968 }
 0x10a   :  { %v1537_v58 = vpop.f32.mrb[3].mxu0  ;;  %v1587_v59 = vpop.f32.mrb[0].mxu1 }
 0x10b   :  { %v1538_v60 = vadd.f32 %v1537_v58, %v1536_v56  ;;  %v1214_v61 = vadd.f32 %v1535_v55, %v934_v52  ;;  %v1278_v62 = vpop.f32.mrb[1].mxu1 }
 0x10c   :  { %v1588_v63 = vpop.f32.mrb[2].mxu1 }
 0x10d   :  { %v1217_v0 = vadd.f32 %v1538_v60, %v939_v57  ;;  %v1279_v2 = vadd.f32 %v1278_v62, %v1214_v61  ;;  %v1281_v3 = vpop.f32.mrb[3].mxu1 }
 0x10f   :  { %v1317_v5 = vmul.f32 0.1, %v1279_v2  ;;  %v1282_v6 = vadd.f32 %v1281_v3, %v1217_v0  ;;  %v1539_v7 = vpop.f32.mrb[4].mxu0  ;;  %vm1309_vm1 = vcmp.ge.f32.partialorder %v1279_v2, 0.0 }
 0x110   :  { %v1540_v8 = vpop.f32.mrb[5].mxu0 }
 0x111   :  { %vm1310_vm2 = vcmp.ge.f32.partialorder %v1282_v6, 0.0  ;;  %v1318_v9 = vmul.f32 0.1, %v1282_v6  ;;  %v1541_v10 = vadd.f32 %v1540_v8, %v1539_v7  ;;  %v1542_v11 = vpop.f32.mrb[6].mxu0  ;;  %v1325_v14 = vsel %vm1309_vm1, %v1279_v2, %v1317_v5 }
 0x112   :  { %v1543_v12 = vpop.f32.mrb[7].mxu0  ;;  %v1591_v13 = vpop.f32.mrb[4].mxu1 }
 0x113   :  { %v1326_v16 = vsel %vm1310_vm2, %v1282_v6, %v1318_v9  ;;  %v1222_v17 = vadd.f32 %v1541_v10, %v944_v4  ;;  %v1544_v18 = vadd.f32 %v1543_v12, %v1542_v11  ;;  %v1294_v19 = vpop.f32.mrb[5].mxu1 }
 0x114   :  { %v1497_v20 = vpack.c.bf16 %v1326_v16, %v1325_v14  ;;  %v1592_v22 = vpop.f32.mrb[6].mxu1 }
 0x115   :  { %v1287_v23 = vadd.f32 %v1587_v59, %v1222_v17  ;;  %v1225_v24 = vadd.f32 %v1544_v18, %v949_v21  ;;  %v1297_v25 = vpop.f32.mrb[7].mxu1 }
 0x116   :  { %1498 = vst [vmem:[%s1952_s4] sm:$0xff] %v1497_v20  }
 0x117   :  { %v1319_v26 = vmul.f32 0.1, %v1287_v23  ;;  %v1290_v1 = vadd.f32 %v1588_v63, %v1225_v24  ;;  %v1545_v15 = vpop.f32.mrb[8].mxu0  ;;  %vm1311_vm3 = vcmp.ge.f32.partialorder %v1287_v23, 0.0 }
 0x118   :  { %v1546_v27 = vpop.f32.mrb[9].mxu0 }
 0x119   :  { %vm1312_vm4 = vcmp.ge.f32.partialorder %v1290_v1, 0.0  ;;  %v1320_v28 = vmul.f32 0.1, %v1290_v1  ;;  %v1547_v31 = vadd.f32 %v1546_v27, %v1545_v15  ;;  %v1548_v29 = vpop.f32.mrb[10].mxu0  ;;  %v1327_v33 = vsel %vm1311_vm3, %v1287_v23, %v1319_v26 }
 0x11a   :  { %v1549_v32 = vpop.f32.mrb[11].mxu0 }
 0x11b   :  { %v1328_v34 = vsel %vm1312_vm4, %v1290_v1, %v1320_v28  ;;  %v1550_v35 = vadd.f32 %v1549_v32, %v1548_v29  ;;  %v1230_v36 = vadd.f32 %v1547_v31, %v954_v30 }
 0x11c   :  { %v1502_v37 = vpack.c.bf16 %v1328_v34, %v1327_v33 }
 0x11d   :  { %v1295_v39 = vadd.f32 %v1294_v19, %v1230_v36  ;;  %v1233_v40 = vadd.f32 %v1550_v35, %v959_v38 }
 0x11e   :  { %1514 = vst [vmem:[%s1952_s4 + $0x8] sm:$0xff] %v1502_v37  }
 0x11f   :  { %v1321_v41 = vmul.f32 0.1, %v1295_v39  ;;  %v1298_v42 = vadd.f32 %v1297_v25, %v1233_v40  ;;  %v1551_v43 = vpop.f32.mrb[12].mxu0  ;;  %vm1313_vm5 = vcmp.ge.f32.partialorder %v1295_v39, 0.0 }
 0x120   :  { %v1552_v44 = vpop.f32.mrb[13].mxu0 }
 0x121   :  { %vm1314_vm6 = vcmp.ge.f32.partialorder %v1298_v42, 0.0  ;;  %v1322_v45 = vmul.f32 0.1, %v1298_v42  ;;  %v1553_v46 = vadd.f32 %v1552_v44, %v1551_v43  ;;  %v1554_v47 = vpop.f32.mrb[14].mxu0  ;;  %v1329_v50 = vsel %vm1313_vm5, %v1295_v39, %v1321_v41 }
 0x122   :  { %v1555_v49 = vpop.f32.mrb[15].mxu0 }
 0x123   :  { %v1330_v51 = vsel %vm1314_vm6, %v1298_v42, %v1322_v45  ;;  %v1238_v52 = vadd.f32 %v1553_v46, %v964_v48  ;;  %v1556_v53 = vadd.f32 %v1555_v49, %v1554_v47 }
 0x124   :  { %v1507_v55 = vpack.c.bf16 %v1330_v51, %v1329_v50 }
 0x125   :  { %v1303_v56 = vadd.f32 %v1591_v13, %v1238_v52  ;;  %v1241_v57 = vadd.f32 %v1556_v53, %v969_v54 }
 0x126   :  { %1515 = vst [vmem:[%s1952_s4 + $0x10] sm:$0xff] %v1507_v55  }
 0x127   :  { %v1323_v58 = vmul.f32 0.1, %v1303_v56  ;;  %v1306_v59 = vadd.f32 %v1592_v22, %v1241_v57  ;;  %vm1315_vm7 = vcmp.ge.f32.partialorder %v1303_v56, 0.0 }
 0x129   :  { %vm1316_vm8 = vcmp.ge.f32.partialorder %v1306_v59, 0.0  ;;  %v1324_v60 = vmul.f32 0.1, %v1306_v59  ;;  %v1331_v61 = vsel %vm1315_vm7, %v1303_v56, %v1323_v58 }
 0x12b   :  { %v1332_v62 = vsel %vm1316_vm8, %v1306_v59, %v1324_v60 }
 0x12c   :  { %v1512_v63 = vpack.c.bf16 %v1332_v62, %v1331_v61 }
 0x12e   :  { %1516 = vst [vmem:[%s1952_s4 + $0x18] sm:$0xff] %v1512_v63  }

// kernel: projected_subdiscriminator.10
= control target key start
LH: loop header
LB: loop body
LE: loop exit
PB: predicated region body
PF: predicated region fallthrough
CT: control target
= control target key end

     0   :  { %s2859_s0 = inlined_call_operand.vmem [shape: bf16[1,640], index: 0, kind: input, shape index: {}]   ;;  %s2860_s1 = inlined_call_operand.<no memory space> [shape: f32[1,1], index: 1, kind: input, shape index: {}]   ;;  %s2861_s2 = inlined_call_operand.vmem [shape: bf16[576,8], index: 2, kind: input, shape index: {}]   ;;  %s2862_s3 = inlined_call_operand.<no memory space> [shape: bf16[], index: 3, kind: input, shape index: {}]   ;;  %s2863_s4 = inlined_call_operand.vmem [shape: f32[1,128], index: 4, kind: output, shape index: {}]  }
   0x1   :  { %v9_v0 = vstv %s2860_s1  ;;  %v11_v1 = vstv %s2862_s3 }
   0x2   :  { %10 = vst [vmem:[#allocation2] sm:$0x1] %v9_v0  ;;  %v2423_v2 = vunpack.i.l.bf16 %v11_v1 }
   0x3   :  { %v34_v3 = vlaneseq  ;;  %v2153_v4 = vld [vmem:[%s2861_s2 + $0x40] sm:$0xff]   ;;  %v2155_v13 = vld [vmem:[%s2861_s2 + $0x48] sm:$0xff]   ;;  %v2388_v31 = vmov 0.0   ;;  %v2157_v49 = vld [vmem:[%s2861_s2 + $0x50] sm:$0xff]   ;;  %vm2391_vm1 = vmmov 0  }
   0x4   :  { %v31_v5 = vld [vmem:[%s2861_s2] sm:$0xff]   ;;  %v2252_v7 = vpack.c.bf16 %v2423_v2, %v2423_v2  ;;  %v383_v8 = vunpack.c.l.bf16 %v2153_v4  ;;  %v405_v9 = vunpack.c.h.bf16 %v2153_v4  ;;  %v2139_v14 = vld [vmem:[%s2861_s2 + $0x8] sm:$0xff]   ;;  %v427_v21 = vunpack.c.l.bf16 %v2155_v13  ;;  %v2141_v54 = vld [vmem:[%s2861_s2 + $0x10] sm:$0xff]  }
   0x5   :  { %v2185_v6 = vld [vmem:[%s2861_s2 + $0xc0] sm:$0xff]   ;;  %v32_v10 = vunpack.c.l.bf16 %v31_v5  ;;  %v53_v11 = vunpack.c.h.bf16 %v31_v5  ;;  %v2446_v15 = vand.u32 127, %v34_v3  ;;  %v2187_v19 = vld [vmem:[%s2861_s2 + $0xc8] sm:$0xff]   ;;  %v449_v22 = vunpack.c.h.bf16 %v2155_v13  ;;  %v2189_v59 = vld [vmem:[%s2861_s2 + $0xd0] sm:$0xff]  }
   0x6   :  { %v2169_v12 = vld [vmem:[%s2861_s2 + $0x80] sm:$0xff]   ;;  %v1087_v16 = vunpack.c.l.bf16 %v2185_v6  ;;  %v1109_v17 = vunpack.c.h.bf16 %v2185_v6  ;;  %2253 = vst [vmem:[#allocation8 + $0x120] sm:$0xff] %v2252_v7   ;;  %2258 = vst [vmem:[#allocation8 + $0x128] sm:$0xff] %v2252_v7   ;;  %v75_v23 = vunpack.c.l.bf16 %v2139_v14  ;;  %v97_v24 = vunpack.c.h.bf16 %v2139_v14  ;;  %v2171_v44 = vld [vmem:[%s2861_s2 + $0x88] sm:$0xff]  }
   0x7   :  { %v735_v18 = vunpack.c.l.bf16 %v2169_v12  ;;  %2263 = vst [vmem:[#allocation8 + $0x130] sm:$0xff] %v2252_v7   ;;  %2268 = vst [vmem:[#allocation8 + $0x138] sm:$0xff] %v2252_v7   ;;  %v757_v20 = vunpack.c.h.bf16 %v2169_v12  ;;  %vm37_vm0 = vcmp.lt.s32.totalorder %v2446_v15, 8  ;;  %v1131_v25 = vunpack.c.l.bf16 %v2187_v19  ;;  %v2173_v0 = vld [vmem:[%s2861_s2 + $0x90] sm:$0xff]   ;;  %v2159_v7 = vld [vmem:[%s2861_s2 + $0x58] sm:$0xff]  }
   0x8   :  { %v1153_v26 = vunpack.c.h.bf16 %v2187_v19  ;;  %v389_v27 = vsel %vm37_vm0, %v383_v8, %v2423_v2  ;;  %v411_v28 = vsel %vm37_vm0, %v405_v9, %v2423_v2  ;;  %v38_v29 = vsel %vm37_vm0, %v32_v10, %v2423_v2  ;;  %v2143_v12 = vld [vmem:[%s2861_s2 + $0x18] sm:$0xff]  }
   0x9   :  { %v59_v30 = vsel %vm37_vm0, %v53_v11, %v2423_v2  ;;  %v391_v32 = vpack.c.bf16 %v2388_v31, %v389_v27  ;;  %v413_v33 = vpack.c.bf16 %v2388_v31, %v411_v28  ;;  %v39_v34 = vpack.c.bf16 %v2388_v31, %v38_v29  ;;  %v2191_v29 = vld [vmem:[%s2861_s2 + $0xd8] sm:$0xff]  }
   0xa   :  { %v61_v35 = vpack.c.bf16 %v2388_v31, %v59_v30  ;;  %v1093_v36 = vsel %vm37_vm0, %v1087_v16, %v2423_v2  ;;  %v1115_v37 = vsel %vm37_vm0, %v1109_v17, %v2423_v2  ;;  %v741_v38 = vsel %vm37_vm0, %v735_v18, %v2423_v2 }
   0xb   :  { %v763_v39 = vsel %vm37_vm0, %v757_v20, %v2423_v2  ;;  %393 = vst [vmem:[#allocation8 + $0x40] sm:$0xf] %v391_v32  ;;  %415 = vst [vmem:[#allocation8 + $0x44] sm:$0xf] %v413_v33  ;;  %v1095_v40 = vpack.c.bf16 %v2388_v31, %v1093_v36  ;;  %v1117_v41 = vpack.c.bf16 %v2388_v31, %v1115_v37  ;;  %v779_v57 = vunpack.c.l.bf16 %v2171_v44  ;;  %v2175_v36 = vld [vmem:[%s2861_s2 + $0x98] sm:$0xff]   ;;  %v2161_v37 = vld [vmem:[%s2861_s2 + $0x60] sm:$0xff]  }
   0xc   :  { %41 = vst [vmem:[#allocation8] sm:$0xf] %v39_v34  ;;  %63 = vst [vmem:[#allocation8 + $0x4] sm:$0xf] %v61_v35  ;;  %v743_v42 = vpack.c.bf16 %v2388_v31, %v741_v38  ;;  %v765_v43 = vpack.c.bf16 %v2388_v31, %v763_v39  ;;  %v433_v45 = vsel %vm37_vm0, %v427_v21, %v2423_v2  ;;  %v801_v58 = vunpack.c.h.bf16 %v2171_v44 }
   0xd   :  { %v455_v46 = vsel %vm37_vm0, %v449_v22, %v2423_v2  ;;  %v81_v47 = vsel %vm37_vm0, %v75_v23, %v2423_v2  ;;  %v103_v48 = vsel %vm37_vm0, %v97_v24, %v2423_v2  ;;  %1097 = vst [vmem:[#allocation8 + $0xc0] sm:$0xf] %v1095_v40  ;;  %1119 = vst [vmem:[#allocation8 + $0xc4] sm:$0xf] %v1117_v41  ;;  %v471_v62 = vunpack.c.l.bf16 %v2157_v49 }
   0xe   :  { %745 = vst [vmem:[#allocation8 + $0x80] sm:$0xf] %v743_v42  ;;  %767 = vst [vmem:[#allocation8 + $0x84] sm:$0xf] %v765_v43  ;;  %v435_v50 = vpack.c.bf16 %v2388_v31, %v433_v45  ;;  %v457_v51 = vpack.c.bf16 %v2388_v31, %v455_v46  ;;  %v83_v52 = vpack.c.bf16 %v2388_v31, %v81_v47  ;;  %v493_v63 = vunpack.c.h.bf16 %v2157_v49  ;;  %v2145_v43 = vld [vmem:[%s2861_s2 + $0x20] sm:$0xff]  }
   0xf   :  { %v105_v53 = vpack.c.bf16 %v2388_v31, %v103_v48  ;;  %v1137_v55 = vsel %vm37_vm0, %v1131_v25, %v2423_v2  ;;  %v1159_v56 = vsel %vm37_vm0, %v1153_v26, %v2423_v2  ;;  %v785_v1 = vsel %vm37_vm0, %v779_v57, %v2423_v2 }
  0x10   :  { %437 = vst [vmem:[#allocation8 + $0x48] sm:$0xf] %v435_v50  ;;  %459 = vst [vmem:[#allocation8 + $0x4c] sm:$0xf] %v457_v51  ;;  %v1139_v60 = vpack.c.bf16 %v2388_v31, %v1137_v55  ;;  %v1161_v61 = vpack.c.bf16 %v2388_v31, %v1159_v56  ;;  %v807_v4 = vsel %vm37_vm0, %v801_v58, %v2423_v2  ;;  %v119_v5 = vunpack.c.l.bf16 %v2141_v54 }
  0x11   :  { %85 = vst [vmem:[#allocation8 + $0x8] sm:$0xf] %v83_v52  ;;  %107 = vst [vmem:[#allocation8 + $0xc] sm:$0xf] %v105_v53  ;;  %v141_v6 = vunpack.c.h.bf16 %v2141_v54  ;;  %v787_v8 = vpack.c.bf16 %v2388_v31, %v785_v1  ;;  %v809_v9 = vpack.c.bf16 %v2388_v31, %v807_v4  ;;  %v477_v10 = vsel %vm37_vm0, %v471_v62, %v2423_v2 }
  0x12   :  { %1141 = vst [vmem:[#allocation8 + $0xc8] sm:$0xf] %v1139_v60  ;;  %1163 = vst [vmem:[#allocation8 + $0xcc] sm:$0xf] %v1161_v61  ;;  %v499_v11 = vsel %vm37_vm0, %v493_v63, %v2423_v2  ;;  %v2347_v13 = vld [vmem:[#allocation8 + $0x40] sm:$0xff]   ;;  %v479_v14 = vpack.c.bf16 %v2388_v31, %v477_v10  ;;  %v125_v17 = vsel %vm37_vm0, %v119_v5, %v2423_v2  ;;  %v1175_v22 = vunpack.c.l.bf16 %v2189_v59 }
  0x13   :  { %v501_v16 = vpack.c.bf16 %v2388_v31, %v499_v11  ;;  %v147_v18 = vsel %vm37_vm0, %v141_v6, %v2423_v2  ;;  %v2348_v19 = vld [vmem:[#allocation8] sm:$0xff]   ;;  %789 = vst [vmem:[#allocation8 + $0x88] sm:$0xf] %v787_v8  ;;  %811 = vst [vmem:[#allocation8 + $0x8c] sm:$0xf] %v809_v9  ;;  %v127_v20 = vpack.c.bf16 %v2388_v31, %v125_v17  ;;  %v1197_v23 = vunpack.c.h.bf16 %v2189_v59 }
  0x14   :  { %v149_v21 = vpack.c.bf16 %v2388_v31, %v147_v18  ;;  %2269 = vmatprep.subr.bf16.mxu0 %v2347_v13  ;;  %v2349_v24 = vld [vmem:[#allocation8 + $0xc0] sm:$0xff]   ;;  %481 = vst [vmem:[#allocation8 + $0x50] sm:$0xf] %v479_v14  ;;  %v823_v25 = vunpack.c.l.bf16 %v2173_v0  ;;  %v845_v26 = vunpack.c.h.bf16 %v2173_v0  ;;  %v515_v27 = vunpack.c.l.bf16 %v2159_v7 }
  0x15   :  { %503 = vst [vmem:[#allocation8 + $0x54] sm:$0xf] %v501_v16  ;;  %v537_v28 = vunpack.c.h.bf16 %v2159_v7  ;;  %2270 = vmatpush3.bf16.msra.mxu0 %v2348_v19  ;;  %v2350_v30 = vld [vmem:[#allocation8 + $0x80] sm:$0xff]   ;;  %129 = vst [vmem:[#allocation8 + $0x10] sm:$0xf] %v127_v20  ;;  %v1181_v32 = vsel %vm37_vm0, %v1175_v22, %v2423_v2  ;;  %v1203_v33 = vsel %vm37_vm0, %v1197_v23, %v2423_v2  ;;  %v163_v34 = vunpack.c.l.bf16 %v2143_v12 }
  0x16   :  { %151 = vst [vmem:[#allocation8 + $0x14] sm:$0xf] %v149_v21  ;;  %v185_v35 = vunpack.c.h.bf16 %v2143_v12  ;;  %2291 = vmatprep.subr.bf16.mxu1 %v2349_v24  ;;  %v1183_v39 = vpack.c.bf16 %v2388_v31, %v1181_v32  ;;  %v1205_v40 = vpack.c.bf16 %v2388_v31, %v1203_v33  ;;  %v829_v41 = vsel %vm37_vm0, %v823_v25, %v2423_v2  ;;  %v2193_v63 = vld [vmem:[%s2861_s2 + $0xe0] sm:$0xff]   ;;  %v2163_v18 = vld [vmem:[%s2861_s2 + $0x68] sm:$0xff]  }
  0x17   :  { %v2351_v38 = vld [vmem:[#allocation8 + $0x48] sm:$0xff]   ;;  %v851_v42 = vsel %vm37_vm0, %v845_v26, %v2423_v2  ;;  %2292 = vmatpush3.bf16.msra.mxu1 %v2350_v30  ;;  %v831_v45 = vpack.c.bf16 %v2388_v31, %v829_v41  ;;  %v521_v47 = vsel %vm37_vm0, %v515_v27, %v2423_v2  ;;  %v543_v48 = vsel %vm37_vm0, %v537_v28, %v2423_v2  ;;  %v2177_v17 = vld [vmem:[%s2861_s2 + $0xa0] sm:$0xff]  }
  0x18   :  { %v2352_v44 = vld [vmem:[#allocation8 + $0x8] sm:$0xff]   ;;  %v853_v46 = vpack.c.bf16 %v2388_v31, %v851_v42  ;;  %2271 = vmatprep.subr.bf16.mxu0 %v2351_v38  ;;  %1185 = vst [vmem:[#allocation8 + $0xd0] sm:$0xf] %v1183_v39  ;;  %1207 = vst [vmem:[#allocation8 + $0xd4] sm:$0xf] %v1205_v40  ;;  %v523_v50 = vpack.c.bf16 %v2388_v31, %v521_v47  ;;  %v545_v51 = vpack.c.bf16 %v2388_v31, %v543_v48 }
  0x19   :  { %v2353_v49 = vld [vmem:[#allocation8 + $0xc8] sm:$0xff]   ;;  %v169_v52 = vsel %vm37_vm0, %v163_v34, %v2423_v2  ;;  %v191_v53 = vsel %vm37_vm0, %v185_v35, %v2423_v2  ;;  %2272 = vmatpush3.bf16.msra.mxu0 %v2352_v44  ;;  %833 = vst [vmem:[#allocation8 + $0x90] sm:$0xf] %v831_v45  ;;  %v1219_v56 = vunpack.c.l.bf16 %v2191_v29  ;;  %v1241_v57 = vunpack.c.h.bf16 %v2191_v29 }
  0x1a   :  { %855 = vst [vmem:[#allocation8 + $0x94] sm:$0xf] %v853_v46  ;;  %v171_v54 = vpack.c.bf16 %v2388_v31, %v169_v52  ;;  %v193_v55 = vpack.c.bf16 %v2388_v31, %v191_v53  ;;  %2293 = vmatprep.subr.bf16.mxu1 %v2353_v49  ;;  %v2354_v58 = vld [vmem:[#allocation8 + $0x88] sm:$0xff]   ;;  %525 = vst [vmem:[#allocation8 + $0x58] sm:$0xf] %v523_v50  ;;  %v867_v59 = vunpack.c.l.bf16 %v2175_v36  ;;  %v889_v60 = vunpack.c.h.bf16 %v2175_v36 }
  0x1b   :  { %547 = vst [vmem:[#allocation8 + $0x5c] sm:$0xf] %v545_v51  ;;  %v559_v61 = vunpack.c.l.bf16 %v2161_v37  ;;  %v581_v62 = vunpack.c.h.bf16 %v2161_v37  ;;  %v1225_v1 = vsel %vm37_vm0, %v1219_v56, %v2423_v2  ;;  %v1247_v4 = vsel %vm37_vm0, %v1241_v57, %v2423_v2  ;;  %2294 = vmatpush3.bf16.msra.mxu1 %v2354_v58  ;;  %v2147_v23 = vld [vmem:[%s2861_s2 + $0x28] sm:$0xff]   ;;  %v2165_v51 = vld [vmem:[%s2861_s2 + $0x70] sm:$0xff]  }
  0x1c   :  { %v2355_v0 = vld [vmem:[#allocation8 + $0x50] sm:$0xff]   ;;  %173 = vst [vmem:[#allocation8 + $0x18] sm:$0xf] %v171_v54  ;;  %195 = vst [vmem:[#allocation8 + $0x1c] sm:$0xf] %v193_v55  ;;  %v207_v5 = vunpack.c.l.bf16 %v2145_v43  ;;  %v229_v6 = vunpack.c.h.bf16 %v2145_v43  ;;  %v1227_v8 = vpack.c.bf16 %v2388_v31, %v1225_v1  ;;  %v1249_v9 = vpack.c.bf16 %v2388_v31, %v1247_v4  ;;  %v2195_v35 = vld [vmem:[%s2861_s2 + $0xe8] sm:$0xff]  }
  0x1d   :  { %v2356_v7 = vld [vmem:[#allocation8 + $0x10] sm:$0xff]   ;;  %v873_v10 = vsel %vm37_vm0, %v867_v59, %v2423_v2  ;;  %v895_v11 = vsel %vm37_vm0, %v889_v60, %v2423_v2  ;;  %2273 = vmatprep.subr.bf16.mxu0 %v2355_v0  ;;  %v565_v14 = vsel %vm37_vm0, %v559_v61, %v2423_v2  ;;  %v587_v16 = vsel %vm37_vm0, %v581_v62, %v2423_v2  ;;  %v2179_v50 = vld [vmem:[%s2861_s2 + $0xa8] sm:$0xff]  }
  0x1e   :  { %v875_v12 = vpack.c.bf16 %v2388_v31, %v873_v10  ;;  %v897_v13 = vpack.c.bf16 %v2388_v31, %v895_v11  ;;  %2274 = vmatpush3.bf16.msra.mxu0 %v2356_v7  ;;  %1229 = vst [vmem:[#allocation8 + $0xd8] sm:$0xf] %v1227_v8  ;;  %1251 = vst [vmem:[#allocation8 + $0xdc] sm:$0xf] %v1249_v9  ;;  %v567_v19 = vpack.c.bf16 %v2388_v31, %v565_v14  ;;  %v2149_v56 = vld [vmem:[%s2861_s2 + $0x30] sm:$0xff]  }
  0x1f   :  { %v589_v20 = vpack.c.bf16 %v2388_v31, %v587_v16  ;;  %v213_v21 = vsel %vm37_vm0, %v207_v5, %v2423_v2  ;;  %v235_v22 = vsel %vm37_vm0, %v229_v6, %v2423_v2  ;;  %v2357_v24 = vld [vmem:[#allocation8 + $0xd0] sm:$0xff]   ;;  %v1263_v27 = vunpack.c.l.bf16 %v2193_v63 }
  0x20   :  { %877 = vst [vmem:[#allocation8 + $0x98] sm:$0xf] %v875_v12  ;;  %899 = vst [vmem:[#allocation8 + $0x9c] sm:$0xf] %v897_v13  ;;  %v215_v25 = vpack.c.bf16 %v2388_v31, %v213_v21  ;;  %v237_v26 = vpack.c.bf16 %v2388_v31, %v235_v22  ;;  %v1285_v28 = vunpack.c.h.bf16 %v2193_v63  ;;  %v911_v30 = vunpack.c.l.bf16 %v2177_v17  ;;  %2295 = vmatprep.subr.bf16.mxu1 %v2357_v24  ;;  %v2197_v5 = vld [vmem:[%s2861_s2 + $0xf0] sm:$0xff]   ;;  %v2167_v22 = vld [vmem:[%s2861_s2 + $0x78] sm:$0xff]  }
  0x21   :  { %v2358_v29 = vld [vmem:[#allocation8 + $0x90] sm:$0xff]   ;;  %569 = vst [vmem:[#allocation8 + $0x60] sm:$0xf] %v567_v19  ;;  %591 = vst [vmem:[#allocation8 + $0x64] sm:$0xf] %v589_v20  ;;  %v933_v32 = vunpack.c.h.bf16 %v2177_v17  ;;  %v603_v33 = vunpack.c.l.bf16 %v2163_v18  ;;  %v625_v34 = vunpack.c.h.bf16 %v2163_v18  ;;  %v1269_v37 = vsel %vm37_vm0, %v1263_v27, %v2423_v2 }
  0x22   :  { %v2359_v36 = vld [vmem:[#allocation8 + $0x58] sm:$0xff]   ;;  %217 = vst [vmem:[#allocation8 + $0x20] sm:$0xf] %v215_v25  ;;  %239 = vst [vmem:[#allocation8 + $0x24] sm:$0xf] %v237_v26  ;;  %v1291_v38 = vsel %vm37_vm0, %v1285_v28, %v2423_v2  ;;  %v251_v39 = vunpack.c.l.bf16 %v2147_v23  ;;  %v273_v40 = vunpack.c.h.bf16 %v2147_v23  ;;  %2296 = vmatpush3.bf16.msra.mxu1 %v2358_v29  ;;  %v1271_v42 = vpack.c.bf16 %v2388_v31, %v1269_v37  ;;  %v2181_v21 = vld [vmem:[%s2861_s2 + $0xb0] sm:$0xff]  }
  0x23   :  { %v2360_v41 = vld [vmem:[#allocation8 + $0x18] sm:$0xff]   ;;  %v1293_v43 = vpack.c.bf16 %v2388_v31, %v1291_v38  ;;  %v917_v44 = vsel %vm37_vm0, %v911_v30, %v2423_v2  ;;  %v939_v45 = vsel %vm37_vm0, %v933_v32, %v2423_v2  ;;  %2275 = vmatprep.subr.bf16.mxu0 %v2359_v36  ;;  %v609_v48 = vsel %vm37_vm0, %v603_v33, %v2423_v2 }
  0x24   :  { %v919_v46 = vpack.c.bf16 %v2388_v31, %v917_v44  ;;  %v941_v47 = vpack.c.bf16 %v2388_v31, %v939_v45  ;;  %v631_v49 = vsel %vm37_vm0, %v625_v34, %v2423_v2  ;;  %2276 = vmatpush3.bf16.msra.mxu0 %v2360_v41  ;;  %1273 = vst [vmem:[#allocation8 + $0xe0] sm:$0xf] %v1271_v42  ;;  %v1307_v60 = vunpack.c.l.bf16 %v2195_v35  ;;  %v2151_v27 = vld [vmem:[%s2861_s2 + $0x38] sm:$0xff]  }
  0x25   :  { %1295 = vst [vmem:[#allocation8 + $0xe4] sm:$0xf] %v1293_v43  ;;  %v611_v52 = vpack.c.bf16 %v2388_v31, %v609_v48  ;;  %v633_v53 = vpack.c.bf16 %v2388_v31, %v631_v49  ;;  %v257_v54 = vsel %vm37_vm0, %v251_v39, %v2423_v2  ;;  %v279_v55 = vsel %vm37_vm0, %v273_v40, %v2423_v2  ;;  %v2361_v57 = vld [vmem:[#allocation8 + $0xd8] sm:$0xff]  }
  0x26   :  { %921 = vst [vmem:[#allocation8 + $0xa0] sm:$0xf] %v919_v46  ;;  %943 = vst [vmem:[#allocation8 + $0xa4] sm:$0xf] %v941_v47  ;;  %v259_v58 = vpack.c.bf16 %v2388_v31, %v257_v54  ;;  %v281_v59 = vpack.c.bf16 %v2388_v31, %v279_v55  ;;  %v1329_v61 = vunpack.c.h.bf16 %v2195_v35  ;;  %v955_v63 = vunpack.c.l.bf16 %v2179_v50  ;;  %2297 = vmatprep.subr.bf16.mxu1 %v2361_v57  ;;  %v2199_v39 = vld [vmem:[%s2861_s2 + $0xf8] sm:$0xff]  }
  0x27   :  { %v2362_v62 = vld [vmem:[#allocation8 + $0x98] sm:$0xff]   ;;  %613 = vst [vmem:[#allocation8 + $0x68] sm:$0xf] %v611_v52  ;;  %635 = vst [vmem:[#allocation8 + $0x6c] sm:$0xf] %v633_v53  ;;  %v977_v0 = vunpack.c.h.bf16 %v2179_v50  ;;  %v647_v1 = vunpack.c.l.bf16 %v2165_v51  ;;  %v669_v4 = vunpack.c.h.bf16 %v2165_v51  ;;  %v1313_v7 = vsel %vm37_vm0, %v1307_v60, %v2423_v2 }
  0x28   :  { %v2363_v6 = vld [vmem:[#allocation8 + $0x60] sm:$0xff]   ;;  %261 = vst [vmem:[#allocation8 + $0x28] sm:$0xf] %v259_v58  ;;  %283 = vst [vmem:[#allocation8 + $0x2c] sm:$0xf] %v281_v59  ;;  %v1335_v8 = vsel %vm37_vm0, %v1329_v61, %v2423_v2  ;;  %v295_v9 = vunpack.c.l.bf16 %v2149_v56  ;;  %v317_v10 = vunpack.c.h.bf16 %v2149_v56  ;;  %2298 = vmatpush3.bf16.msra.mxu1 %v2362_v62  ;;  %v1315_v12 = vpack.c.bf16 %v2388_v31, %v1313_v7  ;;  %v2183_v54 = vld [vmem:[%s2861_s2 + $0xb8] sm:$0xff]  }
  0x29   :  { %v2364_v11 = vld [vmem:[#allocation8 + $0x20] sm:$0xff]   ;;  %v1337_v13 = vpack.c.bf16 %v2388_v31, %v1335_v8  ;;  %v961_v14 = vsel %vm37_vm0, %v955_v63, %v2423_v2  ;;  %v983_v16 = vsel %vm37_vm0, %v977_v0, %v2423_v2  ;;  %2277 = vmatprep.subr.bf16.mxu0 %v2363_v6  ;;  %v653_v19 = vsel %vm37_vm0, %v647_v1, %v2423_v2 }
  0x2a   :  { %v963_v17 = vpack.c.bf16 %v2388_v31, %v961_v14  ;;  %v985_v18 = vpack.c.bf16 %v2388_v31, %v983_v16  ;;  %v675_v20 = vsel %vm37_vm0, %v669_v4, %v2423_v2  ;;  %2278 = vmatpush3.bf16.msra.mxu0 %v2364_v11  ;;  %1317 = vst [vmem:[#allocation8 + $0xe8] sm:$0xf] %v1315_v12  ;;  %v1351_v32 = vunpack.c.l.bf16 %v2197_v5  ;;  %v2201_v59 = vld [vmem:[%s2861_s2 + $0x100] sm:$0xff]   ;;  %v2203_v1 = vld [vmem:[%s2861_s2 + $0x108] sm:$0xff]  }
  0x2b   :  { %1339 = vst [vmem:[#allocation8 + $0xec] sm:$0xf] %v1337_v13  ;;  %v655_v23 = vpack.c.bf16 %v2388_v31, %v653_v19  ;;  %v677_v24 = vpack.c.bf16 %v2388_v31, %v675_v20  ;;  %v301_v25 = vsel %vm37_vm0, %v295_v9, %v2423_v2  ;;  %v323_v26 = vsel %vm37_vm0, %v317_v10, %v2423_v2  ;;  %v2205_v9 = vld [vmem:[%s2861_s2 + $0x110] sm:$0xff]   ;;  %v2793_v20 = vld [vmem:[%s2859_s0] sm:$0x1f] }
  0x2c   :  { %v2365_v28 = vld [vmem:[#allocation8 + $0xe0] sm:$0xff]   ;;  %965 = vst [vmem:[#allocation8 + $0xa8] sm:$0xf] %v963_v17  ;;  %987 = vst [vmem:[#allocation8 + $0xac] sm:$0xf] %v985_v18  ;;  %v303_v29 = vpack.c.bf16 %v2388_v31, %v301_v25  ;;  %v325_v30 = vpack.c.bf16 %v2388_v31, %v323_v26  ;;  %v1373_v33 = vunpack.c.h.bf16 %v2197_v5  ;;  %v999_v35 = vunpack.c.l.bf16 %v2181_v21  ;;  %v2207_v25 = vld [vmem:[%s2861_s2 + $0x118] sm:$0xff]  }
  0x2d   :  { %v2366_v34 = vld [vmem:[#allocation8 + $0xa0] sm:$0xff]   ;;  %657 = vst [vmem:[#allocation8 + $0x70] sm:$0xf] %v655_v23  ;;  %679 = vst [vmem:[#allocation8 + $0x74] sm:$0xf] %v677_v24  ;;  %v1021_v36 = vunpack.c.h.bf16 %v2181_v21  ;;  %v691_v37 = vunpack.c.l.bf16 %v2167_v22  ;;  %v713_v38 = vunpack.c.h.bf16 %v2167_v22  ;;  %2299 = vmatprep.subr.bf16.mxu1 %v2365_v28  ;;  %v1357_v41 = vsel %vm37_vm0, %v1351_v32, %v2423_v2 }
  0x2e   :  { %v2367_v40 = vld [vmem:[#allocation8 + $0x68] sm:$0xff]   ;;  %305 = vst [vmem:[#allocation8 + $0x30] sm:$0xf] %v303_v29  ;;  %327 = vst [vmem:[#allocation8 + $0x34] sm:$0xf] %v325_v30  ;;  %v1379_v42 = vsel %vm37_vm0, %v1373_v33, %v2423_v2  ;;  %v339_v43 = vunpack.c.l.bf16 %v2151_v27  ;;  %v361_v44 = vunpack.c.h.bf16 %v2151_v27  ;;  %2300 = vmatpush3.bf16.msra.mxu1 %v2366_v34  ;;  %v1359_v46 = vpack.c.bf16 %v2388_v31, %v1357_v41 }
  0x2f   :  { %v2368_v45 = vld [vmem:[#allocation8 + $0x28] sm:$0xff]   ;;  %v1381_v47 = vpack.c.bf16 %v2388_v31, %v1379_v42  ;;  %v1005_v48 = vsel %vm37_vm0, %v999_v35, %v2423_v2  ;;  %v1027_v49 = vsel %vm37_vm0, %v1021_v36, %v2423_v2  ;;  %2279 = vmatprep.subr.bf16.mxu0 %v2367_v40  ;;  %v697_v52 = vsel %vm37_vm0, %v691_v37, %v2423_v2 }
  0x30   :  { %v1007_v50 = vpack.c.bf16 %v2388_v31, %v1005_v48  ;;  %v1029_v51 = vpack.c.bf16 %v2388_v31, %v1027_v49  ;;  %v719_v53 = vsel %vm37_vm0, %v713_v38, %v2423_v2  ;;  %2280 = vmatpush3.bf16.msra.mxu0 %v2368_v45  ;;  %1361 = vst [vmem:[#allocation8 + $0xf0] sm:$0xf] %v1359_v46  ;;  %v1395_v63 = vunpack.c.l.bf16 %v2199_v39 }
  0x31   :  { %1383 = vst [vmem:[#allocation8 + $0xf4] sm:$0xf] %v1381_v47  ;;  %v699_v55 = vpack.c.bf16 %v2388_v31, %v697_v52  ;;  %v721_v56 = vpack.c.bf16 %v2388_v31, %v719_v53  ;;  %v345_v57 = vsel %vm37_vm0, %v339_v43, %v2423_v2  ;;  %v367_v58 = vsel %vm37_vm0, %v361_v44, %v2423_v2 }
  0x32   :  { %v2369_v60 = vld [vmem:[#allocation8 + $0xe8] sm:$0xff]   ;;  %1009 = vst [vmem:[#allocation8 + $0xb0] sm:$0xf] %v1007_v50  ;;  %1031 = vst [vmem:[#allocation8 + $0xb4] sm:$0xf] %v1029_v51  ;;  %v347_v61 = vpack.c.bf16 %v2388_v31, %v345_v57  ;;  %v369_v62 = vpack.c.bf16 %v2388_v31, %v367_v58  ;;  %v1417_v0 = vunpack.c.h.bf16 %v2199_v39  ;;  %v2774_v5 = vshrl.u32 %v34_v3, 7 }
  0x33   :  { %v2370_v4 = vld [vmem:[#allocation8 + $0xa8] sm:$0xff]   ;;  %701 = vst [vmem:[#allocation8 + $0x78] sm:$0xf] %v699_v55  ;;  %723 = vst [vmem:[#allocation8 + $0x7c] sm:$0xf] %v721_v56  ;;  %v1043_v8 = vunpack.c.l.bf16 %v2183_v54  ;;  %2301 = vmatprep.subr.bf16.mxu1 %v2369_v60  ;;  %v1401_v11 = vsel %vm37_vm0, %v1395_v63, %v2423_v2  ;;  %v1065_v12 = vunpack.c.h.bf16 %v2183_v54  ;;  %v1439_v13 = vunpack.c.l.bf16 %v2201_v59 }
  0x34   :  { %v2389_v6 = vmov 1966171168   ;;  %v2371_v10 = vld [vmem:[#allocation8 + $0x70] sm:$0xff]   ;;  %349 = vst [vmem:[#allocation8 + $0x38] sm:$0xf] %v347_v61  ;;  %v1423_v3 = vsel %vm37_vm0, %v1417_v0, %v2423_v2  ;;  %2302 = vmatpush3.bf16.msra.mxu1 %v2370_v4  ;;  %v1403_v16 = vpack.c.bf16 %v2388_v31, %v1401_v11  ;;  %v1461_v24 = vunpack.c.h.bf16 %v2201_v59  ;;  %v2384_v4 = vld [vmem:[#allocation8 + $0x120] sm:$0xff]  }
  0x35   :  { %v1731_v7 = vunpack.c.l.s4 %v2389_v6  ;;  %371 = vst [vmem:[#allocation8 + $0x3c] sm:$0xf] %v369_v62  ;;  %v2372_v14 = vld [vmem:[#allocation8 + $0x30] sm:$0xff]   ;;  %v1425_v17 = vpack.c.bf16 %v2388_v31, %v1423_v3  ;;  %v1049_v19 = vsel %vm37_vm0, %v1043_v8, %v2423_v2  ;;  %2281 = vmatprep.subr.bf16.mxu0 %v2371_v10  ;;  %v1071_v22 = vsel %vm37_vm0, %v1065_v12, %v2423_v2  ;;  %v1718_v61 = vld [vmem:[#allocation2] sm:$0x1]  ;;  %v2385_v6 = vld [vmem:[#allocation8 + $0x128] sm:$0xff]  }
  0x36   :  { %v1051_v21 = vpack.c.bf16 %v2388_v31, %v1049_v19  ;;  %v1445_v23 = vsel %vm37_vm0, %v1439_v13, %v2423_v2  ;;  %2282 = vmatpush3.bf16.msra.mxu0 %v2372_v14  ;;  %1405 = vst [vmem:[#allocation8 + $0xf8] sm:$0xf] %v1403_v16  ;;  %v1073_v27 = vpack.c.bf16 %v2388_v31, %v1071_v22  ;;  %v1483_v29 = vunpack.c.l.bf16 %v2203_v1  ;;  %v2386_v8 = vld [vmem:[#allocation8 + $0x130] sm:$0xff]   ;;  %v2387_v10 = vld [vmem:[#allocation8 + $0x138] sm:$0xff]  }
  0x37   :  { %v1732_v18 = vunpack.c.0.s8 %v1731_v7  ;;  %1427 = vst [vmem:[#allocation8 + $0xfc] sm:$0xf] %v1425_v17  ;;  %v1447_v28 = vpack.c.bf16 %v2388_v31, %v1445_v23  ;;  %v1467_v32 = vsel %vm37_vm0, %v1461_v24, %v2423_v2  ;;  %v1505_v33 = vunpack.c.h.bf16 %v2203_v1 }
  0x38   :  { %v2373_v30 = vld [vmem:[#allocation8 + $0xf0] sm:$0xff]   ;;  %1053 = vst [vmem:[#allocation8 + $0xb8] sm:$0xf] %v1051_v21  ;;  %v1527_v34 = vunpack.c.l.bf16 %v2205_v9  ;;  %v1549_v35 = vunpack.c.h.bf16 %v2205_v9  ;;  %1075 = vst [vmem:[#allocation8 + $0xbc] sm:$0xf] %v1073_v27  ;;  %v1469_v38 = vpack.c.bf16 %v2388_v31, %v1467_v32  ;;  %v1489_v39 = vsel %vm37_vm0, %v1483_v29, %v2423_v2 }
  0x39   :  { %v2806_v26 = vsub.s32 %v1732_v18, %v2774_v5  ;;  %v2374_v36 = vld [vmem:[#allocation8 + $0xb0] sm:$0xff]   ;;  %1449 = vst [vmem:[#allocation8 + $0x100] sm:$0xf] %v1447_v28  ;;  %v1571_v40 = vunpack.c.l.bf16 %v2207_v25  ;;  %2303 = vmatprep.subr.bf16.mxu1 %v2373_v30  ;;  %v1491_v42 = vpack.c.bf16 %v2388_v31, %v1489_v39  ;;  %v1511_v43 = vsel %vm37_vm0, %v1505_v33, %v2423_v2 }
  0x3a   :  { %v2375_v41 = vld [vmem:[#allocation8 + $0x78] sm:$0xff]   ;;  %v1533_v44 = vsel %vm37_vm0, %v1527_v34, %v2423_v2  ;;  %v1555_v45 = vsel %vm37_vm0, %v1549_v35, %v2423_v2  ;;  %2304 = vmatpush3.bf16.msra.mxu1 %v2374_v36  ;;  %1471 = vst [vmem:[#allocation8 + $0x104] sm:$0xf] %v1469_v38  ;;  %v1513_v48 = vpack.c.bf16 %v2388_v31, %v1511_v43  ;;  %v1593_v53 = vunpack.c.h.bf16 %v2207_v25 }
  0x3b   :  { %v1736_v37 = vrot.slane %v2793_v20, %v2806_v26  ;;  %v1535_v49 = vpack.c.bf16 %v2388_v31, %v1533_v44  ;;  %2283 = vmatprep.subr.bf16.mxu0 %v2375_v41  ;;  %1493 = vst [vmem:[#allocation8 + $0x108] sm:$0xf] %v1491_v42  ;;  %v1557_v51 = vpack.c.bf16 %v2388_v31, %v1555_v45  ;;  %v2390_v60 = vmov 0  }
  0x3c   :  { %v2376_v46 = vld [vmem:[#allocation8 + $0x38] sm:$0xff]   ;;  %v1577_v52 = vsel %vm37_vm0, %v1571_v40, %v2423_v2  ;;  %1515 = vst [vmem:[#allocation8 + $0x10c] sm:$0xf] %v1513_v48  ;;  %v1599_v57 = vsel %vm37_vm0, %v1593_v53, %v2423_v2  ;;  %2346 = vset.pattern.permute.xlu0 %v2390_v60  ;;  %v1729_v7 = vcombine.high %v2793_v20, %v2793_v20  ;;  %v1726_v3 = vsub.s32 0, %v2774_v5 }
  0x3d   :  { %v1744_v47 = vcombine.high %v1736_v37, %v1736_v37  ;;  %v1751_v50 = vrot.slane %v1736_v37, %v2806_v26  ;;  %2284 = vmatpush3.bf16.msra.mxu0 %v2376_v46  ;;  %1537 = vst [vmem:[#allocation8 + $0x110] sm:$0xf] %v1535_v49  ;;  %v1579_v55 = vpack.c.bf16 %v2388_v31, %v1577_v52  ;;  %1559 = vst [vmem:[#allocation8 + $0x114] sm:$0xf] %v1557_v51 }
  0x3e   :  { %v2377_v56 = vld [vmem:[#allocation8 + $0xf8] sm:$0xff]   ;;  %2322 = vmatprep.subr.bf16.mxu0 %v2388_v31  ;;  %v1601_v59 = vpack.c.bf16 %v2388_v31, %v1599_v57  ;;  %1721 = vperm.xlu0 %2346, %v1718_v61   ;;  %v1743_v9 = vrot.slane %v1729_v7, %v2806_v26 }
  0x3f   :  { %v1765_v54 = vrot.slane %v1744_v47, %v2806_v26  ;;  %1581 = vst [vmem:[#allocation8 + $0x118] sm:$0xf] %v1579_v55  ;;  %2305 = vmatprep.subr.bf16.mxu1 %v2377_v56  ;;  %v2379_v62 = vld [vmem:[#allocation8 + $0xb8] sm:$0xff]   ;;  %v1766_v63 = vcombine.high %v1751_v50, %v1751_v50 }
  0x40   :  { %1603 = vst [vmem:[#allocation8 + $0x11c] sm:$0xf] %v1601_v59  ;;  %2306 = vmatpush3.bf16.msra.mxu1 %v2379_v62  ;;  %v1758_v11 = vrot.slane %v1743_v9, %v2806_v26 }
  0x41   :  { %2045 = vmatprep.mubr.bf16.mxu0 %v1765_v54  ;;  %v1767_v58 = vcombine.high %v1765_v54, %v1765_v54  ;;  %v2380_v15 = vld [vmem:[#allocation8 + $0x100] sm:$0xff]  }
  0x42   :  { %2046 = vmatmul.mubr.bf16.vlgmr.msra.gmra.mrb[0].mxu0 %v1751_v50 }
  0x43   :  { %2085 = vmatprep.mubr.bf16.mxu1 %v1767_v58  ;;  %2338 = vmatprep.mubr.msk.bf16.mxu0 %vm2391_vm1, %v2388_v31  ;;  %v2381_v2 = vld [vmem:[#allocation8 + $0x108] sm:$0xff]  }
  0x44   :  { %2323 = vmatpush3.bf16.msra.mxu0 %v2380_v15  ;;  %2086 = vmatmul.mubr.bf16.vlgmr.msra.gmra.mrb[0].mxu1 %v1766_v63  ;;  %v2382_v0 = vld [vmem:[#allocation8 + $0x110] sm:$0xff]  }
  0x45   :  { %2324 = vmatprep.subr.bf16.mxu0 %v2388_v31 }
  0x47   :  { %v2383_v1 = vld [vmem:[#allocation8 + $0x118] sm:$0xff]  }
  0x48   :  { %2325 = vmatpush3.bf16.msra.mxu0 %v2381_v2 }
  0x49   :  { %2326 = vmatprep.subr.bf16.mxu0 %v2388_v31 }
  0x4c   :  { %2327 = vmatpush3.bf16.msra.mxu0 %v2382_v0 }
  0x4d   :  { %2328 = vmatprep.subr.bf16.mxu0 %v2388_v31 }
  0x50   :  { %2329 = vmatpush3.bf16.msra.mxu0 %v2383_v1 }
  0x51   :  { %2330 = vmatprep.subr.bf16.mxu0 %v2388_v31 }
  0x54   :  { %2331 = vmatpush3.bf16.msra.mxu0 %v2384_v4 }
  0x55   :  { %2332 = vmatprep.subr.bf16.mxu0 %v2388_v31 }
  0x58   :  { %2333 = vmatpush3.bf16.msra.mxu0 %v2385_v6 }
  0x59   :  { %2334 = vmatprep.subr.bf16.mxu0 %v2388_v31 }
  0x5c   :  { %2335 = vmatpush3.bf16.msra.mxu0 %v2386_v8 }
  0x5d   :  { %2336 = vmatprep.subr.bf16.mxu0 %v2388_v31 }
  0x60   :  { %2337 = vmatpush3.bf16.msra.mxu0 %v2387_v10 }
  0x63   :  { %2339 = vmatmul.mubr.bf16.vlgmr.msra.gmra.mrb[4].mxu0 %v1758_v11 }
  0xbd   :  { %v1722_v12 = vpop.permute.xlu0 %1721 }
  0xbe   :  { %v1727_v14 = vrot.slane %v1722_v12, %v1726_v3 }
 0x115   :  { %v2285_v13 = vpop.f32.mrb[0].mxu0 }
 0x116   :  { %v2286_v16 = vpop.f32.mrb[1].mxu0 }
 0x117   :  { %v2287_v17 = vadd.f32 %v2286_v16, %v2285_v13  ;;  %v2288_v18 = vpop.f32.mrb[2].mxu0  ;;  %v2307_v21 = vpop.f32.mrb[0].mxu1 }
 0x118   :  { %v2289_v19 = vpop.f32.mrb[3].mxu0  ;;  %v2308_v22 = vpop.f32.mrb[1].mxu1 }
 0x119   :  { %v2048_v20 = vadd.f32 %v2287_v17, %v1727_v14  ;;  %v2309_v23 = vadd.f32 %v2308_v22, %v2307_v21  ;;  %v2310_v24 = vpop.f32.mrb[2].mxu1 }
 0x11a   :  { %v2311_v25 = vpop.f32.mrb[3].mxu1 }
 0x11b   :  { %v2088_v31 = vadd.f32 %v2309_v23, %v2048_v20 }
 0x136   :  { %v2127_v27 = vpop.f32.mrb[4].mxu0 }
 0x137   :  { %v2128_v26 = vadd.f32 %v2127_v27, %v2088_v31  ;;  %v2340_v28 = vpop.f32.mrb[5].mxu0 }
 0x138   :  { %v2130_v29 = vpop.f32.mrb[6].mxu0 }
 0x139   :  { %2133 = vst [vmem:[%s2863_s4] sm:$0x1] %v2128_v26  ;;  %v2341_v5 = vpop.f32.mrb[7].mxu0 }

</bundles_post_ra>
